<compile_context>
chip_gen: v7x
topology: tpu7x:2x2x1
jax: 0.10.0
libtpu: 0.0.40
codegen_flags: <defaults>
</compile_context>

<pallas_src>
import jax
import jax.numpy as jnp
from jax.experimental import pallas as pl
from jax.experimental.pallas import tpu as pltpu


def _onelayer_gcn_kernel(alpha_ref, x_ref, a_ref, w_ref, b_ref, out_ref):
    # x_ref:     (M, F_in)      VMEM, matmul dtype (M = Bt*N packed node rows)
    # a_ref:     (M, M)         VMEM, matmul dtype, block-diagonal A_norm tile
    # w_ref:     (F_in, F_out)  VMEM, matmul dtype
    # b_ref:     (1, F_out)     VMEM, f32
    # alpha_ref: (1,)           SMEM, f32 (PReLU slope)
    # out_ref:   (Bt, 2*F_out)  VMEM, f32 -> [pool | anchor], lane-dense
    M, _ = x_ref.shape
    F_out = w_ref.shape[1]
    Bt = out_ref.shape[0]
    N = M // Bt

    # (1) Feature transform: one packed MXU matmul over all Bt*N node rows.
    xw = jnp.dot(x_ref[...], w_ref[...],
                 preferred_element_type=jnp.float32)          # (M, F_out) f32

    # (2) Neighborhood aggregation: ONE block-diagonal matmul (DGL batched
    #     graph layout). Off-diagonal blocks are exact zeros, so this equals
    #     the per-subgraph A_norm @ XW. bf16 MXU inputs, f32 accumulation.
    h = jnp.dot(a_ref[...], xw.astype(a_ref.dtype),
                preferred_element_type=jnp.float32)           # (M, F_out) f32

    # (3) Bias + PReLU, all f32 on the VPU (v5e has no bf16 VALU/EUP).
    h = h + b_ref[...]
    alpha = alpha_ref[0]
    h = jnp.where(h >= 0, h, alpha * h)

    # (4) Per-subgraph readouts. Regroup rows into (Bt, N, F_out) (sublane-axis
    #     split; tile-aligned when N is a multiple of 8). Anchor is the last
    #     node of each subgraph; pool = (sum - anchor) / (N - 1), i.e. mean of
    #     h[:-1] without a masked reduction.
    h3 = h.reshape(Bt, N, F_out)
    anchor = h3[:, N - 1, :]                                  # (Bt, F_out)
    pool = (jnp.sum(h3, axis=1) - anchor) * (1.0 / (N - 1))

    # (5) Single lane-dense store: [pool | anchor] fills 2*F_out (=128) lanes.
    out_ref[...] = jnp.concatenate([pool, anchor], axis=-1)


def _pick_block_b(B, N, *, target_rows=256, max_rows=512):
    """Pick the batch tile Bt.

    Bt must divide B and keep the packed row count Bt*N <= max_rows (f32
    intermediates stay clear of vreg spills). Prefer leaving >= 2 grid steps
    (v7x megacore sharding + pipelining) once Bt*N reaches the MXU height
    target (256 rows fills a v6e/v7x MXU pass, >= 128 on v5e), and prefer Bt a
    multiple of 8 so the (Bt, 2*F_out) output block is a full (8k, 128) tile.
    """
    feasible = [d for d in range(1, B + 1) if B % d == 0 and d * N <= max_rows]
    two_step = [d for d in feasible if B // d >= 2]
    if two_step and max(two_step) * N >= target_rows:
        feasible = two_step
    aligned = [d for d in feasible if d % 8 == 0]
    return max(aligned) if aligned else max(feasible)


def onelayer_gcn(x, a_norm, weight, bias, alpha, *,
                 block_b=None, matmul_dtype=jnp.bfloat16):
    """x: (B, N, F_in) node features (last node of each subgraph = anchor),
    a_norm: (B, N, N) = D^-1/2 (A+I) D^-1/2 per subgraph,
    weight: (F_in, F_out), bias: (F_out,), alpha: scalar PReLU slope.
    Returns (subgraph_pool_emb (B, F_out), anchor_out (B, F_out)), both f32."""
    B, N, F_in = x.shape
    F_out = weight.shape[1]
    assert N > 1, "each subgraph needs at least one non-anchor node"

    bt = _pick_block_b(B, N) if block_b is None else block_b
    assert B % bt == 0, "batch tile must divide B"
    grid_len = B // bt
    M = bt * N
    itemsize = jnp.dtype(matmul_dtype).itemsize

    # Node features packed to (B*N, F_in): the DGL batched-graph node order.
    x2d = x.reshape(B * N, F_in).astype(matmul_dtype)

    # Per-grid-step block-diagonal normalized adjacency (Bt subgraphs/tile):
    # a_bd[g, i*N+n, j*N+m] = (i == j) * a_norm[g*bt + i, n, m]  -- exactly the
    # DGL batched-graph adjacency restricted to one tile (plain-JAX glue).
    eye_bt = jnp.eye(bt, dtype=a_norm.dtype)
    a4 = a_norm.reshape(grid_len, bt, N, N)
    a_bd = jnp.einsum("ij,ginm->ginjm", eye_bt, a4)
    a_bd = a_bd.reshape(grid_len, M, M).astype(matmul_dtype)

    w = weight.astype(matmul_dtype)
    bias2d = bias.reshape(1, F_out).astype(jnp.float32)
    alpha1d = jnp.asarray(alpha, dtype=jnp.float32).reshape(1)

    # Explicit VMEM budget: double-buffered in/out blocks + f32 intermediates
    # (xw, h) + headroom, re-derived per tile so the same code is safe on v7x
    # (64 MiB physical VMEM) and on v5e/v6e (128 MiB).
    per_step_in = (M * M * itemsize + M * F_in * itemsize
                   + F_in * F_out * itemsize + F_out * 4)
    per_step_out = bt * 2 * F_out * 4
    f32_intermediates = 2 * M * F_out * 4
    vmem_limit_bytes = int(min(
        2 * (per_step_in + per_step_out) + f32_intermediates + (8 << 20),
        64 << 20))

    # Advisory cost: 2 * (X@W + A@XW) flops, every HBM operand touched once.
    flops = 2 * B * N * F_out * (F_in + N)
    bytes_accessed = int(x2d.size * itemsize + a_bd.size * itemsize
                         + w.size * itemsize + F_out * 4 + B * 2 * F_out * 4)
    cost = pl.CostEstimate(flops=flops, transcendentals=0,
                           bytes_accessed=bytes_accessed)

    # TODO(synk): if N is scaled beyond toy size, add a reduction grid axis
    # over node tiles ("arbitrary", last in the grid) with a VMEM f32
    # accumulator so the adjacency block stays inside the scoped VMEM limit.
    # TODO(synk): on v5e/v6e only, A_norm (values in [0,1]) could be fed as
    # int8 for ~2x MXU throughput; not portable to v7x (no int MXU path).
    out = pl.pallas_call(
        _onelayer_gcn_kernel,
        out_shape=jax.ShapeDtypeStruct((B, 2 * F_out), jnp.float32),
        grid_spec=pltpu.PrefetchScalarGridSpec(
            num_scalar_prefetch=0,
            grid=(grid_len,),
            in_specs=[
                pl.BlockSpec(memory_space=pltpu.SMEM),             # alpha
                pl.BlockSpec((M, F_in), lambda b: (b, 0)),         # x (packed)
                pl.BlockSpec((None, M, M), lambda b: (b, 0, 0)),   # A block-diag
                pl.BlockSpec((F_in, F_out), lambda b: (0, 0)),     # weight
                pl.BlockSpec((1, F_out), lambda b: (0, 0)),        # bias
            ],
            out_specs=pl.BlockSpec((bt, 2 * F_out), lambda b: (b, 0)),
        ),
        compiler_params=pltpu.CompilerParams(
            # >= 2 grid steps -> "parallel" shards across v7x's 2 TensorCores
            # (free on v5e/v6e); a length-1 grid stays "arbitrary".
            dimension_semantics=(
                ("parallel",) if grid_len > 1 else ("arbitrary",)),
            vmem_limit_bytes=vmem_limit_bytes),
        cost_estimate=cost,
    )(alpha1d, x2d, a_bd, w, bias2d)

    return out[:, :F_out], out[:, F_out:]


def _xavier_uniform(key, shape):
    fan_in, fan_out = shape
    limit = (6.0 / (fan_in + fan_out)) ** 0.5
    return jax.random.uniform(key, shape, jnp.float32, -limit, limit)


if __name__ == "__main__":
    # Small shapes consistent with the module's forward: B sampled subgraphs
    # per batch (CoLA batches many small RWR subgraphs), N nodes per subgraph
    # with the last node as the anchor, in_feats -> out_feats GraphConv, PReLU.
    B, N, IN_FEATS, OUT_FEATS = 64, 8, 32, 64

    key = jax.random.PRNGKey(0)
    k_x, k_w, k_adj = jax.random.split(key, 3)

    x = jax.random.normal(k_x, (B, N, IN_FEATS), dtype=jnp.float32)

    # GraphConv params: xavier_uniform weight, zero bias; PReLU alpha = 0.25
    # (the PyTorch default).
    weight = _xavier_uniform(k_w, (IN_FEATS, OUT_FEATS))
    bias = jnp.zeros((OUT_FEATS,), dtype=jnp.float32)
    alpha = 0.25

    # Random symmetric adjacency with self-loops per subgraph (plain-JAX glue)
    # and DGL GraphConv norm='both' normalization D^{-1/2} A D^{-1/2}.
    rand = jax.random.uniform(k_adj, (B, N, N))
    adj = (rand < 0.4).astype(jnp.float32)
    adj = jnp.maximum(adj, jnp.swapaxes(adj, 1, 2))               # symmetric
    adj = jnp.maximum(adj, jnp.eye(N, dtype=jnp.float32)[None])   # self-loops
    deg = adj.sum(axis=-1)
    dinv_sqrt = deg ** -0.5
    a_norm = dinv_sqrt[:, :, None] * adj * dinv_sqrt[:, None, :]

    pool, anchor = onelayer_gcn(x, a_norm, weight, bias, alpha)
    jax.block_until_ready((pool, anchor))

    # Plain-JAX reference mirroring the kernel's mixed precision
    # (bf16 matmul inputs, f32 accumulation / elementwise).
    xb = x.astype(jnp.bfloat16).astype(jnp.float32)
    wb = weight.astype(jnp.bfloat16).astype(jnp.float32)
    ab = a_norm.astype(jnp.bfloat16).astype(jnp.float32)
    xw_ref = jnp.einsum("bni,io->bno", xb, wb)
    xw_ref = xw_ref.astype(jnp.bfloat16).astype(jnp.float32)
    h_ref = jnp.einsum("bnm,bmf->bnf", ab, xw_ref) + bias
    h_ref = jnp.where(h_ref >= 0, h_ref, alpha * h_ref)
    pool_ref = h_ref[:, :-1, :].mean(axis=1)
    anchor_ref = h_ref[:, -1, :]

    assert jnp.allclose(pool, pool_ref, atol=1e-4, rtol=1e-4)
    assert jnp.allclose(anchor, anchor_ref, atol=1e-4, rtol=1e-4)

    print("KERNEL_OK")
</pallas_src>

<mosaic_0001>
module attributes {stable_mosaic.version = 11 : i64} {
  func.func @_onelayer_gcn_kernel(%arg0: i32, %arg1: memref<1xf32, #tpu.memory_space<smem>>, %arg2: memref<256x32xbf16, #tpu.memory_space<vmem>>, %arg3: memref<1x256x256xbf16, #tpu.memory_space<vmem>>, %arg4: memref<32x64xbf16, #tpu.memory_space<vmem>>, %arg5: memref<1x64xf32, #tpu.memory_space<vmem>>, %arg6: memref<32x128xf32, #tpu.memory_space<vmem>>) attributes {dimension_semantics = [#tpu.dimension_semantics<parallel>], iteration_bounds = array<i64: 2>, scalar_prefetch = 0 : i64, scratch_operands = 0 : i64, tpu.core_type = #tpu.core_type<tc>, window_params = [{transform_indices = @transform_0, window_bounds = array<i64: 1>}, {transform_indices = @transform_1, window_bounds = array<i64: 256, 32>}, {transform_indices = @transform_2, window_bounds = array<i64: 1, 256, 256>}, {pipeline_mode = #tpu.pipeline_mode<synchronous>, transform_indices = @transform_3, window_bounds = array<i64: 32, 64>}, {pipeline_mode = #tpu.pipeline_mode<synchronous>, transform_indices = @transform_4, window_bounds = array<i64: 1, 64>}, {transform_indices = @transform_5, window_bounds = array<i64: 32, 128>}]} {
    %c0 = arith.constant 0 : index
    %c0_0 = arith.constant 0 : index
    %0 = vector.load %arg2[%c0, %c0_0] : memref<256x32xbf16, #tpu.memory_space<vmem>>, vector<256x32xbf16>
    %c0_1 = arith.constant 0 : index
    %c0_2 = arith.constant 0 : index
    %1 = vector.load %arg4[%c0_1, %c0_2] : memref<32x64xbf16, #tpu.memory_space<vmem>>, vector<32x64xbf16>
    %cst = arith.constant dense<0.000000e+00> : vector<256x64xf32>
    %2 = tpu.matmul %0, %1, %cst {dimension_numbers = #tpu.dot_dimension_numbers<[1], [0], [0], [1], [0, 0, 1, 1], [], []>} : vector<256x32xbf16>, vector<32x64xbf16>, vector<256x64xf32> -> vector<256x64xf32>
    %c0_3 = arith.constant 0 : index
    %c0_4 = arith.constant 0 : index
    %c0_5 = arith.constant 0 : index
    %3 = vector.load %arg3[%c0_3, %c0_4, %c0_5] : memref<1x256x256xbf16, #tpu.memory_space<vmem>>, vector<1x256x256xbf16>
    %4 = vector.shape_cast %3 : vector<1x256x256xbf16> to vector<256x256xbf16>
    %5 = arith.truncf %2 : vector<256x64xf32> to vector<256x64xbf16>
    %cst_6 = arith.constant dense<0.000000e+00> : vector<256x64xf32>
    %6 = tpu.matmul %4, %5, %cst_6 {dimension_numbers = #tpu.dot_dimension_numbers<[1], [0], [0], [1], [0, 0, 1, 1], [], []>} : vector<256x256xbf16>, vector<256x64xbf16>, vector<256x64xf32> -> vector<256x64xf32>
    %c0_7 = arith.constant 0 : index
    %c0_8 = arith.constant 0 : index
    %7 = vector.load %arg5[%c0_7, %c0_8] : memref<1x64xf32, #tpu.memory_space<vmem>>, vector<1x64xf32>
    %8 = vector.broadcast %7 : vector<1x64xf32> to vector<256x64xf32>
    %9 = arith.addf %6, %8 : vector<256x64xf32>
    %c0_9 = arith.constant 0 : index
    %10 = memref.load %arg1[%c0_9] : memref<1xf32, #tpu.memory_space<smem>>
    %cst_10 = arith.constant 0.000000e+00 : f32
    %11 = vector.broadcast %cst_10 : f32 to vector<256x64xf32>
    %12 = arith.cmpf oge, %9, %11 : vector<256x64xf32>
    %13 = vector.broadcast %10 : f32 to vector<256x64xf32>
    %14 = arith.mulf %13, %9 : vector<256x64xf32>
    %15 = arith.select %12, %9, %14 : vector<256x64xi1>, vector<256x64xf32>
    %16 = vector.shape_cast %15 : vector<256x64xf32> to vector<32x8x64xf32>
    %17 = vector.extract_strided_slice %16 {offsets = [0, 7, 0], sizes = [32, 1, 64], strides = [1, 1, 1]} : vector<32x8x64xf32> to vector<32x1x64xf32>
    %18 = vector.shape_cast %17 : vector<32x1x64xf32> to vector<32x64xf32>
    %cst_11 = arith.constant dense<0.000000e+00> : vector<32x64xf32>
    %19 = vector.multi_reduction <add>, %16, %cst_11 [1] : vector<32x8x64xf32> to vector<32x64xf32>
    %20 = arith.subf %19, %18 : vector<32x64xf32>
    %cst_12 = arith.constant 0.142857149 : f32
    %21 = vector.broadcast %cst_12 : f32 to vector<32x64xf32>
    %22 = arith.mulf %20, %21 : vector<32x64xf32>
    %23 = tpu.concatenate %22, %18 in 1 : vector<32x64xf32>, vector<32x64xf32> -> vector<32x128xf32>
    %c0_13 = arith.constant 0 : index
    %c0_14 = arith.constant 0 : index
    %24 = vector.load %arg6[%c0_13, %c0_14] : memref<32x128xf32, #tpu.memory_space<vmem>>, vector<32x128xf32>
    tpu.vector_store %arg6[%c0_13, %c0_14], %23 {strides = array<i32>} : memref<32x128xf32, #tpu.memory_space<vmem>>, vector<32x128xf32>,
    return
  }
  func.func @transform_0(%arg0: i32) -> i32 {
    %c0_i32 = arith.constant 0 : i32
    %c0_i32_0 = arith.constant 0 : i32
    return %c0_i32 : i32
  }
  func.func @transform_1(%arg0: i32) -> (i32, i32) {
    %c0_i32 = arith.constant 0 : i32
    %c0_i32_0 = arith.constant 0 : i32
    return %arg0, %c0_i32 : i32, i32
  }
  func.func @transform_2(%arg0: i32) -> (i32, i32, i32) {
    %c0_i32 = arith.constant 0 : i32
    %c0_i32_0 = arith.constant 0 : i32
    %c0_i32_1 = arith.constant 0 : i32
    return %arg0, %c0_i32, %c0_i32_0 : i32, i32, i32
  }
  func.func @transform_3(%arg0: i32) -> (i32, i32) {
    %c0_i32 = arith.constant 0 : i32
    %c0_i32_0 = arith.constant 0 : i32
    %c0_i32_1 = arith.constant 0 : i32
    return %c0_i32, %c0_i32_0 : i32, i32
  }
  func.func @transform_4(%arg0: i32) -> (i32, i32) {
    %c0_i32 = arith.constant 0 : i32
    %c0_i32_0 = arith.constant 0 : i32
    %c0_i32_1 = arith.constant 0 : i32
    return %c0_i32, %c0_i32_0 : i32, i32
  }
  func.func @transform_5(%arg0: i32) -> (i32, i32) {
    %c0_i32 = arith.constant 0 : i32
    %c0_i32_0 = arith.constant 0 : i32
    return %arg0, %c0_i32 : i32, i32
  }
}

</mosaic_0001>

<bundles_post_ra>
// kernel: tpu_custom_call.1
= control target key start
LH: loop header
LB: loop body
LE: loop exit
PB: predicated region body
PF: predicated region fallthrough
CT: control target
= control target key end

     0   :  { %s3064_s0 = inlined_call_operand.<no memory space> [shape: f32[1], index: 0, kind: input, shape index: {}]   ;;  %s3065_s1 = inlined_call_operand.vmem [shape: bf16[512,32], index: 1, kind: input, shape index: {}]   ;;  %s3066_s2 = inlined_call_operand.hbm [shape: bf16[2,256,256], index: 2, kind: input, shape index: {}]   ;;  %s3067_s3 = inlined_call_operand.vmem [shape: bf16[32,64], index: 3, kind: input, shape index: {}]   ;;  %s3068_s4 = inlined_call_operand.vmem [shape: f32[1,64], index: 4, kind: input, shape index: {}]   ;;  %s3069_s5 = inlined_call_operand.hbm [shape: f32[64,128], index: 5, kind: output, shape index: {}]  }
   0x1   :  { %10 = sst [smem:[#allocation2]] %s3064_s0 }
   0x2   :  { %11 = vsyncpa [#allocation4], 0 }
   0x3   :  { %13 = vsyncpa [#allocation4 + $0x1], 0 }
   0x4   :  { %14 = vsyncpa [#allocation5], 0 }
   0x5   :  { %16 = vsyncpa [#allocation5 + $0x1], 0  ;;  %s2202_s20 = smov 0   ;;  %s2204_s21 = smov 0  }
   0x6   :  { %s2206_s22 = smov 0   ;;  %s2208_s23 = smov 0  }
   0x7 LB: > { %s2223_s0 = sadd.s32 4294967295, %s2160_s23   ;;  %s1679_s24 = sadd.s32 4294967294, %s2160_s23   ;;  %s2160_s23 = sphi %s2208_s23, %s3128_s23   ;;  %s2156_s22 = sphi %s2206_s22, %s3127_s22   ;;  %s2152_s21 = sphi %s2204_s21, %s3126_s21   ;;  %s2148_s20 = sphi %s2202_s20, %s3125_s20  }
   0x8   : > { %s2227_s25 = sadd.s32 1, %s2160_s23   ;;  %s76_s26 = sadd.s32 1, %s2156_s22 }
   0x9   : > { %s73_s27 = ssub.s32 %s2160_s23, %s2227_s25  ;;  %p83_p0 = scmp.ne.s32.totalorder %s2156_s22, %s2152_s21 }
   0xa   : > { %p74_p1 = scmp.eq.s32.totalorder %s73_s27, 0  ;;  %p84_p2 = scmp.eq.s32.totalorder %s2160_s23, 0 }
   0xb   : > { %p89_p3 = scmp.ne.s32.totalorder %s2152_s21, %s2148_s20  ;;  %p90_p4 = scmp.eq.s32.totalorder %s2223_s0, 0 }
   0xc   : > { %s2239_s28 = scalar_select %p74_p1, %s2156_s22, %s76_s26  }
   0xd   : > { %p2241_p5 = por %p84_p2, %p83_p0  ;;  %p2245_p6 = por %p90_p4, %p89_p3 }
   0xe   : > { %p155_p7 = scmp.eq.s32.totalorder %s2223_s0, 1  ;;  %p161_p8 = scmp.eq.s32.totalorder %s1679_s24, 1 }
   0xf   : > { %p1958_p10 = scmp.lt.s32.totalorder %s2160_s23, 2  ;;  %s199_s8 = sand.u32 1, %s2156_s22  }
  0x10   : > { %p2252_p11 = por %p155_p7, %p83_p0  ;;  %p2256_p12 = por %p161_p8, %p89_p3 }
  0x11   : > { %s1762_s9 = sshll.u32 %s2160_s23, 12  ;;  %s1682_s10 = sshll.u32 %s199_s8, 8 }
  0x12   : > { %s3081_s6 = scalar_select %p2252_p11, 1, 0 }
  0x13   : > { %s3082_s7 = scalar_select %p2256_p12, 1, 0 }
  0x14   : > { %s2265_s13 = scalar_lea.hbm %s3066_s2, %s1762_s9  ;;  %s203_s14 = scalar_lea.vmem [#allocation3], %s1682_s10 }
  0x15   : > { %s210_s15 = sshll.u32 %s203_s14, 4  ;;  %p2269_p13 = pnand %p1958_p10, %p2241_p5  ;;  %s2273_s15 = int_to_ptr.vmem [resolvable:$true] %s210_s15 }
  0x16   : > { %s2275_s17 = scalar_lea.sflag [#allocation4], %s199_s8  ;;  %s2064_s18 = scalar_lea.hbm %s2265_s13, 4096 }
  0x17   : > { %p2065_p0 = scmp.ne.s32.totalorder %s2265_s13, %s2064_s18  ;;  %p2066_p1 = pneg %p2269_p13 }
  0x18   : > { %s2069_s26 = scalar_lea.hbm %s3066_s2, 8192  ;;  %p2070_p4 = scmp.lt.u32.totalorder %s2265_s13, %s3066_s2 }
  0x19   : > { %p2067_p2 = pnand %p2066_p1, %p2065_p0  ;;  %p2071_p5 = scmp.lt.u32.totalorder %s2069_s26, %s2064_s18 }
  0x1a   : > { %p2073_p8 = scmp.lt.u32.totalorder %s2064_s18, %s2265_s13 }
  0x1b   : > { %p2068_p3 = pneg %p2067_p2  ;;  %p2072_p7 = por %p2071_p5, %p2070_p4 }
  0x1d   : > { %p2074_p10 = por %p2073_p8, %p2072_p7 }
  0x1f   : > { %p2075_p9 = pnand %p2074_p10, %p2068_p3 }
  0x21   : > { %2078 = shalt.err (!%p2075_p9)
}
  0x22   : > { %s2079_s8 = scalar_lea.vmem %s2273_s15, 4096  ;;  %s2162_s9 = smov [#allocation3]  }
  0x23   : > { %p2080_p0 = scmp.ne.s32.totalorder %s2273_s15, %s2079_s8  ;;  %s2084_s10 = sshll.u32 %s2162_s9, 4  ;;  %s2085_s10 = int_to_ptr.vmem [resolvable:$false] %s2084_s10 }
  0x24   : > { %s2086_s11 = scalar_lea.vmem %s2085_s10, 8192  ;;  %p2087_p11 = scmp.lt.s32.totalorder %s2273_s15, %s2085_s10 }
  0x25   : > { %p2082_p2 = pnand %p2080_p0, %p2066_p1  ;;  %p2088_p4 = scmp.lt.s32.totalorder %s2086_s11, %s2079_s8 }
  0x27   : > { %p2083_p12 = pneg %p2082_p2  ;;  %p2089_p5 = por %p2088_p4, %p2087_p11 }
  0x29   : > { %p2090_p7 = pnand %p2089_p5, %p2083_p12 }
  0x2b   : > { %2093 = shalt.err (!%p2090_p7)
}
  0x2c   : > { %s2163_s12 = smov 128   ;;  %s2164_s14 = smov 8  }
  0x2d   : > { %1953 = dma.hbm_to_vmem [thread:$0]  (!%p2269_p13), %s2265_s13, 4096, %s2273_s15, %s2275_s17, %s2163_s12, %s2163_s12, %s2164_s14  }
  0x2e   : > { %p1685_p9 = scmp.ge.s32.totalorder %s2160_s23, 1  ;;  %p218_p1 = scmp.lt.s32.totalorder %s2160_s23, 3 }
  0x30   : > { %p219_p3 = pnand %p1685_p9, %p218_p1 }
  0x32   : > { %222 = sbr.rel (%p219_p3) target bundleno = 832 (0x340), region = 40 }
  0x39   : > { %s2306_s18 = sand.u32 1, %s2152_s21  }
  0x3a   : > { %s1686_s19 = sshll.u32 %s2306_s18, 8  ;;  %s225_s24 = scalar_lea.sflag [#allocation4], %s2306_s18 }
  0x3b   : > { %s2310_s26 = scalar_lea.vmem [#allocation3], %s1686_s19 }
  0x3c   : > { %2139 = dma.done.wait (%p2245_p6), %s225_s24, 4096  }
  0x3d   : > { %2141 = vsyncadd (%p2245_p6), %s225_s24, 4294963200  ;;  %s1688_s13 = sshll.u32 %s2223_s0, 5  ;;  %v1997_v0 = vld [vmem:[%s3067_s3] sm:$0xff]   ;;  %v1998_v1 = vld [vmem:[%s3067_s3 + $0x8] sm:$0xff]   ;;  %vm396_vm0 = vcmask 261120   ;;  %s982_s10 = sld [smem:[#allocation2]] }
  0x3e   : > { %p261_p11 = scmp.lt.s32.totalorder %s1688_s13, 63  ;;  %1894 = vmatprep.subr.bf16.mxu0 %v1997_v0  ;;  %v2017_v18 = vld [vmem:[%s2310_s26 + $0x4] ss:$8 sps:$4 sm:$0xff]   ;;  %v2020_v19 = vld [vmem:[%s2310_s26 + $0x54] ss:$8 sps:$4 sm:$0xff]   ;;  %vm1080_vm1 = vcmask 523264  }
  0x3f   : > { %1895 = vmatpush3.bf16.msra.mxu0 %v1997_v0  ;;  %893 = vmatprep.mubr.bf16.mxu1 %v2020_v19  ;;  %v2041_v19 = vld [vmem:[%s2310_s26 + $0x94] ss:$8 sps:$4 sm:$0xff]   ;;  %s2165_s14 = smov 64   ;;  %vm1403_vm8 = vcmask 1041409   ;;  %vm1406_vm15 = vcmask 1042434   ;;  %s1763_s16 = sshll.u32 %s2223_s0, 9 }
  0x40   : > { %s3130_s13 = smov (!%p261_p11, %s1688_s13), 63  ;;  %1896 = vmatprep.subr.bf16.mxu0 %v1998_v1  ;;  %s3018_s29 = scalar_lea.hbm %s3069_s5, %s1763_s16 }
  0x41   : > { %s1689_s15 = sshll.u32 %s3130_s13, 2  ;;  %s1581_s8 = scalar_lea.sflag [#allocation5], %s2306_s18 }
  0x42   : > { %s2320_s27 = scalar_lea.vmem %s3065_s1, %s1689_s15  ;;  %p3122_p12 = scmp.ne.s32.totalorder %s3081_s6, 0 }
  0x43   : > { %v1999_v2 = vld [vmem:[%s2320_s27] sm:$0xff]   ;;  %v2000_v3 = vld [vmem:[%s2320_s27 + $0x8] sm:$0xff]   ;;  %1897 = vmatpush3.bf16.msra.mxu0 %v1998_v1  ;;  %v2001_v4 = vld [vmem:[%s2320_s27 + $0x10] sm:$0xff]   ;;  %s2166_s0 = smov [#allocation6]  }
  0x44   : > { %1898 = vmatprep.mubr.msk.bf16.mxu0 %vm396_vm0, %v1999_v2  ;;  %v2002_v5 = vld [vmem:[%s2320_s27 + $0x18] sm:$0xff]   ;;  %v2003_v6 = vld [vmem:[%s2320_s27 + $0x20] sm:$0xff]   ;;  %v2004_v7 = vld [vmem:[%s2320_s27 + $0x28] sm:$0xff]   ;;  %s2098_s9 = sshll.u32 %s2166_s0, 4  ;;  %s2099_s9 = int_to_ptr.vmem [resolvable:$false] %s2098_s9 }
  0x45   : > { %v2005_v8 = vld [vmem:[%s2320_s27 + $0x30] sm:$0xff]   ;;  %v2006_v9 = vld [vmem:[%s2320_s27 + $0x38] sm:$0xff]   ;;  %v2007_v10 = vld [vmem:[%s2320_s27 + $0x40] sm:$0xff]  }
  0x46   : > { %1899 = vmatmul.mubr.msk.bf16.vlgmr.msra.gmra.mrb[0].mxu0 %vm396_vm0, %v2000_v3  ;;  %v2008_v11 = vld [vmem:[%s2320_s27 + $0x48] sm:$0xff]   ;;  %v2009_v12 = vld [vmem:[%s2320_s27 + $0x50] sm:$0xff]   ;;  %v2010_v13 = vld [vmem:[%s2320_s27 + $0x58] sm:$0xff]  }
  0x47   : > { %1902 = vmatprep.mubr.msk.bf16.mxu0 %vm396_vm0, %v2001_v4  ;;  %v2011_v14 = vld [vmem:[%s2320_s27 + $0x60] sm:$0xff]   ;;  %v2012_v15 = vld [vmem:[%s2320_s27 + $0x68] sm:$0xff]   ;;  %v2013_v16 = vld [vmem:[%s2320_s27 + $0x70] sm:$0xff]  }
  0x48   : > { %v2014_v17 = vld [vmem:[%s2320_s27 + $0x78] sm:$0xff]   ;;  %v2015_v4 = vld [vmem:[%s2310_s26] ss:$8 sps:$4 sm:$0xff]  }
  0x4e   : > { %1903 = vmatmul.mubr.msk.bf16.gmra.mrb[4].mxu0 %vm396_vm0, %v2002_v5  ;;  %v2018_v5 = vld [vmem:[%s2310_s26 + $0x50] ss:$8 sps:$4 sm:$0xff]  }
  0x4f   : > { %1906 = vmatprep.mubr.msk.bf16.mxu0 %vm396_vm0, %v2003_v6  ;;  %v2021_v6 = vld [vmem:[%s2310_s26 + $0x14] ss:$8 sps:$4 sm:$0xff]  }
  0x56   : > { %1907 = vmatmul.mubr.msk.bf16.gmra.mrb[8].mxu0 %vm396_vm0, %v2004_v7  ;;  %v2023_v7 = vld [vmem:[%s2310_s26 + $0x64] ss:$8 sps:$4 sm:$0xff]  }
  0x57   : > { %1910 = vmatprep.mubr.msk.bf16.mxu0 %vm396_vm0, %v2005_v8  ;;  %v2025_v8 = vld [vmem:[%s2310_s26 + $0x10] ss:$8 sps:$4 sm:$0xff]  }
  0x5e   : > { %1911 = vmatmul.mubr.msk.bf16.gmra.mrb[12].mxu0 %vm396_vm0, %v2006_v9  ;;  %v2026_v9 = vld [vmem:[%s2310_s26 + $0x60] ss:$8 sps:$4 sm:$0xff]  }
  0x5f   : > { %1914 = vmatprep.mubr.msk.bf16.mxu0 %vm396_vm0, %v2007_v10  ;;  %v2027_v10 = vld [vmem:[%s2310_s26 + $0x24] ss:$8 sps:$4 sm:$0xff]  }
  0x66   : > { %1915 = vmatmul.mubr.msk.bf16.gmra.mrb[16].mxu0 %vm396_vm0, %v2008_v11  ;;  %v2029_v11 = vld [vmem:[%s2310_s26 + $0x74] ss:$8 sps:$4 sm:$0xff]  }
  0x67   : > { %1918 = vmatprep.mubr.msk.bf16.mxu0 %vm396_vm0, %v2009_v12  ;;  %v2031_v12 = vld [vmem:[%s2310_s26 + $0x20] ss:$8 sps:$4 sm:$0xff]  }
  0x6e   : > { %1919 = vmatmul.mubr.msk.bf16.gmra.mrb[20].mxu0 %vm396_vm0, %v2010_v13  ;;  %v2032_v13 = vld [vmem:[%s2310_s26 + $0x70] ss:$8 sps:$4 sm:$0xff]  }
  0x6f   : > { %1922 = vmatprep.mubr.msk.bf16.mxu0 %vm396_vm0, %v2011_v14  ;;  %v2033_v14 = vld [vmem:[%s2310_s26 + $0x34] ss:$8 sps:$4 sm:$0xff]  }
  0x76   : > { %1923 = vmatmul.mubr.msk.bf16.gmra.mrb[24].mxu0 %vm396_vm0, %v2012_v15  ;;  %v2035_v15 = vld [vmem:[%s2310_s26 + $0x84] ss:$8 sps:$4 sm:$0xff]  }
  0x77   : > { %1926 = vmatprep.mubr.msk.bf16.mxu0 %vm396_vm0, %v2013_v16  ;;  %v2037_v16 = vld [vmem:[%s2310_s26 + $0x30] ss:$8 sps:$4 sm:$0xff]  }
  0x7e   : > { %1927 = vmatmul.mubr.msk.bf16.gmra.mrb[28].mxu0 %vm396_vm0, %v2014_v17  ;;  %v2038_v17 = vld [vmem:[%s2310_s26 + $0x80] ss:$8 sps:$4 sm:$0xff]  }
  0x7f   : > { %853 = vmatprep.mubr.bf16.mxu0 %v2017_v18  ;;  %v2039_v18 = vld [vmem:[%s2310_s26 + $0x44] ss:$8 sps:$4 sm:$0xff]  }
 0x119   : > { %v1900_v20 = vpop.f32.mrb[0].mxu0 }
 0x11a   : > { %v479_v21 = vpop.f32.mrb[1].mxu0 }
 0x11b   : > { %v1901_v22 = vpop.f32.mrb[2].mxu0 }
 0x11c   : > { %v639_v23 = vpack.c.bf16 %v1901_v22, %v1900_v20  ;;  %v482_v24 = vpop.f32.mrb[3].mxu0  ;;  %v2043_v20 = vld [vmem:[%s2310_s26 + $0x40] ss:$8 sps:$4 sm:$0xff]   ;;  %v2045_v22 = vld [vmem:[%s2310_s26 + $0xa4] ss:$8 sps:$4 sm:$0xff]  }
 0x11d   : > { %v638_v25 = vpack.c.bf16 %v482_v24, %v479_v21  ;;  %v2044_v21 = vld [vmem:[%s2310_s26 + $0x90] ss:$8 sps:$4 sm:$0xff]   ;;  %v2048_v24 = vld [vmem:[%s2310_s26 + $0xb4] ss:$8 sps:$4 sm:$0xff]  }
 0x121   : > { %v1904_v26 = vpop.f32.mrb[4].mxu0 }
 0x122   : > { %v495_v27 = vpop.f32.mrb[5].mxu0 }
 0x123   : > { %v1905_v28 = vpop.f32.mrb[6].mxu0 }
 0x124   : > { %v641_v29 = vpack.c.bf16 %v1905_v28, %v1904_v26  ;;  %v498_v30 = vpop.f32.mrb[7].mxu0  ;;  %v2051_v26 = vld [vmem:[%s2310_s26 + $0xc4] ss:$8 sps:$4 sm:$0xff]   ;;  %v2054_v28 = vld [vmem:[%s2310_s26 + $0xd4] ss:$8 sps:$4 sm:$0xff]  }
 0x125   : > { %v640_v31 = vpack.c.bf16 %v498_v30, %v495_v27  ;;  %v2053_v27 = vld [vmem:[%s2310_s26 + $0xc0] ss:$8 sps:$4 sm:$0xff]   ;;  %v2057_v30 = vld [vmem:[%s2310_s26 + $0xe4] ss:$8 sps:$4 sm:$0xff]  }
 0x129   : > { %v1908_v32 = vpop.f32.mrb[8].mxu0 }
 0x12a   : > { %v511_v33 = vpop.f32.mrb[9].mxu0 }
 0x12b   : > { %v1909_v34 = vpop.f32.mrb[10].mxu0 }
 0x12c   : > { %v643_v35 = vpack.c.bf16 %v1909_v34, %v1908_v32  ;;  %v514_v36 = vpop.f32.mrb[11].mxu0  ;;  %v2060_v32 = vld [vmem:[%s2310_s26 + $0xf4] ss:$8 sps:$4 sm:$0xff]  }
 0x12d   : > { %v642_v37 = vpack.c.bf16 %v514_v36, %v511_v33  ;;  %v2062_v33 = vld [vmem:[%s2310_s26 + $0xf0] ss:$8 sps:$4 sm:$0xff]   ;;  %v2395_v36 = vld [vmem:[%s3068_s4] ss:$0 sm:$0xff] }
 0x131   : > { %v1912_v38 = vpop.f32.mrb[12].mxu0 }
 0x132   : > { %v527_v39 = vpop.f32.mrb[13].mxu0 }
 0x133   : > { %v1913_v40 = vpop.f32.mrb[14].mxu0 }
 0x134   : > { %v645_v41 = vpack.c.bf16 %v1913_v40, %v1912_v38  ;;  %v530_v42 = vpop.f32.mrb[15].mxu0 }
 0x135   : > { %v644_v43 = vpack.c.bf16 %v530_v42, %v527_v39 }
 0x139   : > { %v1916_v44 = vpop.f32.mrb[16].mxu0 }
 0x13a   : > { %v543_v45 = vpop.f32.mrb[17].mxu0 }
 0x13b   : > { %v1917_v46 = vpop.f32.mrb[18].mxu0 }
 0x13c   : > { %v647_v47 = vpack.c.bf16 %v1917_v46, %v1916_v44  ;;  %v546_v48 = vpop.f32.mrb[19].mxu0 }
 0x13d   : > { %v646_v49 = vpack.c.bf16 %v546_v48, %v543_v45 }
 0x13f   : > { %1782 = vmatprep.subr.bf16.mxu0 %v646_v49  ;;  %1930 = vmatprep.subr.bf16.mxu1 %v646_v49 }
 0x140   : > { %1783 = vmatpush3.bf16.msra.mxu0 %v638_v25  ;;  %1938 = vmatpush3.bf16.msra.mxu1 %v638_v25  ;;  %v2050_v25 = vld [vmem:[%s2310_s26 + $0xb0] ss:$8 sps:$4 sm:$0xff]  }
 0x141   : > { %v1920_v50 = vpop.f32.mrb[20].mxu0  ;;  %1784 = vmatprep.subr.bf16.mxu0 %v647_v47  ;;  %1931 = vmatprep.subr.bf16.mxu1 %v647_v47 }
 0x142   : > { %v559_v51 = vpop.f32.mrb[21].mxu0 }
 0x143   : > { %v1921_v52 = vpop.f32.mrb[22].mxu0 }
 0x144   : > { %v649_v53 = vpack.c.bf16 %v1921_v52, %v1920_v50  ;;  %v562_v54 = vpop.f32.mrb[23].mxu0  ;;  %1785 = vmatpush3.bf16.msra.mxu0 %v639_v23  ;;  %1939 = vmatpush3.bf16.msra.mxu1 %v639_v23  ;;  %v2047_v23 = vld [vmem:[%s2310_s26 + $0xa0] ss:$8 sps:$4 sm:$0xff]  }
 0x145   : > { %v648_v55 = vpack.c.bf16 %v562_v54, %v559_v51 }
 0x147   : > { %1786 = vmatprep.subr.bf16.mxu0 %v648_v55  ;;  %1932 = vmatprep.subr.bf16.mxu1 %v648_v55 }
 0x148   : > { %1787 = vmatpush3.bf16.msra.mxu0 %v640_v31  ;;  %1940 = vmatpush3.bf16.msra.mxu1 %v640_v31  ;;  %v2059_v31 = vld [vmem:[%s2310_s26 + $0xe0] ss:$8 sps:$4 sm:$0xff]  }
 0x149   : > { %v1924_v56 = vpop.f32.mrb[24].mxu0  ;;  %1788 = vmatprep.subr.bf16.mxu0 %v649_v53  ;;  %1933 = vmatprep.subr.bf16.mxu1 %v649_v53 }
 0x14a   : > { %v575_v57 = vpop.f32.mrb[25].mxu0 }
 0x14b   : > { %v1925_v58 = vpop.f32.mrb[26].mxu0 }
 0x14c   : > { %v651_v59 = vpack.c.bf16 %v1925_v58, %v1924_v56  ;;  %v578_v60 = vpop.f32.mrb[27].mxu0  ;;  %1789 = vmatpush3.bf16.msra.mxu0 %v641_v29  ;;  %1941 = vmatpush3.bf16.msra.mxu1 %v641_v29  ;;  %v2056_v29 = vld [vmem:[%s2310_s26 + $0xd0] ss:$8 sps:$4 sm:$0xff]   ;;  %s1687_s26 = sshll.u32 %s2306_s18, 5 }
 0x14d   : > { %v650_v61 = vpack.c.bf16 %v578_v60, %v575_v57  ;;  %s2933_s13 = scalar_lea.vmem [#allocation6], %s1687_s26 }
 0x14e   : > { %s1594_s15 = sshll.u32 %s2933_s13, 4  ;;  %s3013_s15 = int_to_ptr.vmem [resolvable:$true] %s1594_s15 }
 0x14f   : > { %1790 = vmatprep.subr.bf16.mxu0 %v650_v61  ;;  %1934 = vmatprep.subr.bf16.mxu1 %v650_v61  ;;  %s2094_s30 = scalar_lea.vmem %s3013_s15, 512  ;;  %p2101_p10 = scmp.lt.s32.totalorder %s3013_s15, %s2099_s9 }
 0x150   : > { %1791 = vmatpush3.bf16.msra.mxu0 %v642_v37  ;;  %1942 = vmatpush3.bf16.msra.mxu1 %v642_v37  ;;  %p2095_p6 = scmp.ne.s32.totalorder %s3013_s15, %s2094_s30 }
 0x151   : > { %v1928_v62 = vpop.f32.mrb[28].mxu0  ;;  %1792 = vmatprep.subr.bf16.mxu0 %v651_v59  ;;  %1935 = vmatprep.subr.bf16.mxu1 %v651_v59 }
 0x152   : > { %v591_v63 = vpop.f32.mrb[29].mxu0  ;;  %p2096_p13 = pnand %p2095_p6, %p3122_p12 }
 0x153   : > { %v1929_v0 = vpop.f32.mrb[30].mxu0 }
 0x154   : > { %v653_v1 = vpack.c.bf16 %v1929_v0, %v1928_v62  ;;  %v594_v2 = vpop.f32.mrb[31].mxu0  ;;  %1793 = vmatpush3.bf16.msra.mxu0 %v643_v35  ;;  %1943 = vmatpush3.bf16.msra.mxu1 %v643_v35  ;;  %p2097_p8 = pneg %p2096_p13 }
 0x155   : > { %v652_v3 = vpack.c.bf16 %v594_v2, %v591_v63 }
 0x157   : > { %1794 = vmatprep.subr.bf16.mxu0 %v652_v3  ;;  %1936 = vmatprep.subr.bf16.mxu1 %v652_v3 }
 0x158   : > { %1795 = vmatpush3.bf16.msra.mxu0 %v644_v43  ;;  %1944 = vmatpush3.bf16.msra.mxu1 %v644_v43  ;;  %v2397_v43 = vstv %s982_s10  ;;  %s2100_s10 = scalar_lea.vmem %s2099_s9, 1024 }
 0x159   : > { %1796 = vmatprep.subr.bf16.mxu0 %v653_v1  ;;  %1937 = vmatprep.subr.bf16.mxu1 %v653_v1  ;;  %p2102_p0 = scmp.lt.s32.totalorder %s2100_s10, %s2094_s30 }
 0x15b   : > { %p2103_p2 = por %p2102_p0, %p2101_p10 }
 0x15c   : > { %1797 = vmatpush3.bf16.msra.mxu0 %v645_v41  ;;  %1945 = vmatpush3.bf16.msra.mxu1 %v645_v41 }
 0x15d   : > { %p2104_p4 = pnand %p2103_p2, %p2097_p8 }
 0x15f   : > { %854 = vmatmul.mubr.bf16.vlgmr.msra.gmra.mrb[32].mxu0 %v2015_v4  ;;  %894 = vmatmul.mubr.bf16.vlgmr.msra.gmra.mrb[0].mxu1 %v2018_v5 }
 0x160   : > { %861 = vmatprep.mubr.bf16.mxu0 %v2021_v6  ;;  %901 = vmatprep.mubr.bf16.mxu1 %v2023_v7 }
 0x167   : > { %862 = vmatmul.mubr.bf16.gmra.mrb[36].mxu0 %v2025_v8  ;;  %902 = vmatmul.mubr.bf16.gmra.mrb[4].mxu1 %v2026_v9 }
 0x168   : > { %869 = vmatprep.mubr.bf16.mxu0 %v2027_v10  ;;  %909 = vmatprep.mubr.bf16.mxu1 %v2029_v11 }
 0x16f   : > { %870 = vmatmul.mubr.bf16.gmra.mrb[40].mxu0 %v2031_v12  ;;  %910 = vmatmul.mubr.bf16.gmra.mrb[8].mxu1 %v2032_v13 }
 0x170   : > { %877 = vmatprep.mubr.bf16.mxu0 %v2033_v14  ;;  %917 = vmatprep.mubr.bf16.mxu1 %v2035_v15 }
 0x177   : > { %878 = vmatmul.mubr.bf16.gmra.mrb[44].mxu0 %v2037_v16  ;;  %918 = vmatmul.mubr.bf16.gmra.mrb[12].mxu1 %v2038_v17 }
 0x178   : > { %885 = vmatprep.mubr.bf16.mxu0 %v2039_v18  ;;  %925 = vmatprep.mubr.bf16.mxu1 %v2041_v19 }
 0x17f   : > { %886 = vmatmul.mubr.bf16.gmra.mrb[48].mxu0 %v2043_v20  ;;  %926 = vmatmul.mubr.bf16.gmra.mrb[16].mxu1 %v2044_v21 }
 0x180   : > { %933 = vmatprep.mubr.bf16.mxu1 %v2045_v22 }
 0x187   : > { %934 = vmatmul.mubr.bf16.gmra.mrb[20].mxu1 %v2047_v23 }
 0x188   : > { %941 = vmatprep.mubr.bf16.mxu1 %v2048_v24 }
 0x18f   : > { %942 = vmatmul.mubr.bf16.gmra.mrb[24].mxu1 %v2050_v25 }
 0x190   : > { %949 = vmatprep.mubr.bf16.mxu1 %v2051_v26 }
 0x197   : > { %950 = vmatmul.mubr.bf16.gmra.mrb[28].mxu1 %v2053_v27 }
 0x198   : > { %957 = vmatprep.mubr.bf16.mxu1 %v2054_v28 }
 0x19f   : > { %958 = vmatmul.mubr.bf16.gmra.mrb[32].mxu1 %v2056_v29 }
 0x1a0   : > { %965 = vmatprep.mubr.bf16.mxu1 %v2057_v30 }
 0x1a7   : > { %966 = vmatmul.mubr.bf16.gmra.mrb[36].mxu1 %v2059_v31 }
 0x1a8   : > { %973 = vmatprep.mubr.bf16.mxu1 %v2060_v32 }
 0x1af   : > { %974 = vmatmul.mubr.bf16.gmra.mrb[40].mxu1 %v2062_v33 }
 0x232   : > { %v1798_v34 = vpop.f32.mrb[32].mxu0  ;;  %v1828_v35 = vpop.f32.mrb[0].mxu1 }
 0x233   : > { %v1799_v37 = vpop.f32.mrb[33].mxu0  ;;  %v1829_v38 = vpop.f32.mrb[1].mxu1 }
 0x234   : > { %v1800_v39 = vadd.f32 %v1799_v37, %v1798_v34  ;;  %v1830_v40 = vadd.f32 %v1829_v38, %v1828_v35  ;;  %v1831_v41 = vpop.f32.mrb[2].mxu1  ;;  %v1801_v42 = vpop.f32.mrb[34].mxu0 }
 0x235   : > { %v1832_v44 = vpop.f32.mrb[3].mxu1  ;;  %v1802_v45 = vpop.f32.mrb[35].mxu0 }
 0x236   : > { %v856_v46 = vadd.f32 %v1800_v39, %v2395_v36  ;;  %v896_v47 = vadd.f32 %v1830_v40, %v2395_v36  ;;  %v1833_v48 = vadd.f32 %v1832_v44, %v1831_v41  ;;  %v1803_v49 = vadd.f32 %v1802_v45, %v1801_v42 }
 0x238   : > { %vm993_vm2 = vcmp.ge.f32.partialorder %v896_v47, 0.0  ;;  %v1026_v50 = vmul.f32 %v2397_v43, %v896_v47  ;;  %v899_v51 = vadd.f32 %v1833_v48, %v2395_v36  ;;  %vm983_vm3 = vcmp.ge.f32.partialorder %v856_v46, 0.0 }
 0x239   : > { %v1016_v52 = vmul.f32 %v2397_v43, %v856_v46  ;;  %v859_v53 = vadd.f32 %v1803_v49, %v2395_v36 }
 0x23a   : > { %v2405_v54 = vsel %vm993_vm2, %v896_v47, %v1026_v50  ;;  %vm994_vm4 = vcmp.ge.f32.partialorder %v899_v51, 0.0  ;;  %v1027_v55 = vmul.f32 %v2397_v43, %v899_v51  ;;  %v1834_v56 = vpop.f32.mrb[4].mxu1  ;;  %v1804_v57 = vpop.f32.mrb[36].mxu0 }
 0x23b   : > { %v1151_v58 = vsel %vm1080_vm1, %v2405_v54, 0.0  ;;  %v1835_v60 = vpop.f32.mrb[5].mxu1  ;;  %v2411_v61 = vsel %vm983_vm3, %v856_v46, %v1016_v52  ;;  %vm984_vm5 = vcmp.ge.f32.partialorder %v859_v53, 0.0  ;;  %v1805_v62 = vpop.f32.mrb[37].mxu0  ;;  %v1017_v9 = vmul.f32 %v2397_v43, %v859_v53 }
 0x23c   : > { %v1152_v63 = vrot.slane %v1151_v58, 4  ;;  %v2413_v0 = vsel %vm994_vm4, %v899_v51, %v1027_v55  ;;  %v1836_v1 = vadd.f32 %v1835_v60, %v1834_v56  ;;  %1555 = vrot.lane.b32.xlu0 %v2411_v61, %s2165_s14  ;;  %v1081_v2 = vsel %vm1080_vm1, %v2411_v61, 0.0  ;;  %v1837_v3 = vpop.f32.mrb[6].mxu1  ;;  %v1807_v4 = vpop.f32.mrb[38].mxu0 }
 0x23d   : > { %v1158_v5 = vsel %vm1080_vm1, %v2413_v0, 0.0  ;;  %v1082_v7 = vrot.slane %v1081_v2, 4  ;;  %v1838_v8 = vpop.f32.mrb[7].mxu1  ;;  %v1808_v10 = vpop.f32.mrb[39].mxu0  ;;  %v2425_v16 = vsel %vm984_vm5, %v859_v53, %v1017_v9  ;;  %v1806_v17 = vadd.f32 %v1805_v62, %v1804_v57 }
 0x23e   : > { %v1153_v11 = vadd.f32 %v1152_v63, %v1151_v58  ;;  %v1159_v12 = vrot.slane %v1158_v5, 4  ;;  %v904_v13 = vadd.f32 %v1836_v1, %v2395_v36  ;;  %v1839_v14 = vadd.f32 %v1838_v8, %v1837_v3 }
 0x23f   : > { %v1083_v15 = vadd.f32 %v1082_v7, %v1081_v2  ;;  %v2427_v18 = vadd.f32 %v1808_v10, %v1807_v4  ;;  %v1088_v24 = vsel %vm1080_vm1, %v2425_v16, 0.0  ;;  %v1500_v25 = vrot.slane %v2425_v16, 7 }
 0x240   : > { %v1154_v19 = vrot.slane %v1153_v11, 2  ;;  %v1160_v20 = vadd.f32 %v1159_v12, %v1158_v5  ;;  %vm995_vm6 = vcmp.ge.f32.partialorder %v904_v13, 0.0  ;;  %v1028_v21 = vmul.f32 %v2397_v43, %v904_v13 }
 0x241   : > { %v1084_v22 = vrot.slane %v1083_v15, 2  ;;  %v907_v23 = vadd.f32 %v1839_v14, %v2395_v36  ;;  %v1089_v29 = vrot.slane %v1088_v24, 4  ;;  %v864_v48 = vadd.f32 %v1806_v17, %v2395_v36 }
 0x242   : > { %v1155_v26 = vadd.f32 %v1154_v19, %v1153_v11  ;;  %v1161_v27 = vrot.slane %v1160_v20, 2  ;;  %v2434_v28 = vsel %vm995_vm6, %v904_v13, %v1028_v21  ;;  %v1840_v30 = vpop.f32.mrb[8].mxu1  ;;  %v2436_v31 = vpop.f32.mrb[40].mxu0  ;;  %vm1409_vm6 = vcmask 1043459  }
 0x243   : > { %v1165_v32 = vsel %vm1080_vm1, %v2434_v28, 0.0  ;;  %v1085_v34 = vadd.f32 %v1084_v22, %v1083_v15  ;;  %vm996_vm7 = vcmp.ge.f32.partialorder %v907_v23, 0.0  ;;  %v1841_v35 = vpop.f32.mrb[9].mxu1  ;;  %v2441_v37 = vpop.f32.mrb[41].mxu0  ;;  %v1029_v41 = vmul.f32 %v2397_v43, %v907_v23 }
 0x244   : > { %v1156_v38 = vrot.slane %v1155_v26, 1  ;;  %v1162_v39 = vadd.f32 %v1161_v27, %v1160_v20  ;;  %v1166_v40 = vrot.slane %v1165_v32, 4  ;;  %v1843_v42 = vpop.f32.mrb[10].mxu1  ;;  %v2444_v44 = vpop.f32.mrb[42].mxu0  ;;  %v1090_v46 = vadd.f32 %v1089_v29, %v1088_v24 }
 0x245   : > { %v1086_v45 = vrot.slane %v1085_v34, 1  ;;  %v1842_v47 = vadd.f32 %v1841_v35, %v1840_v30  ;;  %v1844_v49 = vpop.f32.mrb[11].mxu1  ;;  %v2447_v50 = vpop.f32.mrb[43].mxu0  ;;  %v2450_v55 = vsel %vm996_vm7, %v907_v23, %v1029_v41  ;;  %vm985_vm9 = vcmp.ge.f32.partialorder %v864_v48, 0.0 }
 0x246   : > { %v1157_v51 = vadd.f32 %v1156_v38, %v1155_v26  ;;  %v1163_v52 = vrot.slane %v1162_v39, 1  ;;  %v1167_v53 = vadd.f32 %v1166_v40, %v1165_v32  ;;  %v1172_v57 = vsel %vm1080_vm1, %v2450_v55, 0.0 }
 0x247   : > { %v1087_v56 = vadd.f32 %v1086_v45, %v1085_v34  ;;  %v1091_v60 = vrot.slane %v1090_v46, 2  ;;  %v1173_v2 = vrot.slane %v1172_v57, 4  ;;  %v912_v5 = vadd.f32 %v1842_v47, %v2395_v36 }
 0x248   : > { %v1315_v62 = vsub.f32 %v1157_v51, %v2405_v54  ;;  %v1164_v63 = vadd.f32 %v1163_v52, %v1162_v39  ;;  %v1168_v1 = vrot.slane %v1167_v53, 2  ;;  %v1018_v27 = vmul.f32 %v2397_v43, %v864_v48 }
 0x249   : > { %v1305_v3 = vsub.f32 %v1087_v56, %v2411_v61  ;;  %v1092_v4 = vadd.f32 %v1091_v60, %v1090_v46  ;;  %v1174_v10 = vadd.f32 %v1173_v2, %v1172_v57  ;;  %vm997_vm10 = vcmp.ge.f32.partialorder %v912_v5, 0.0 }
 0x24a   : > { %v2458_v7 = vmul.f32 0.14285715, %v1315_v62  ;;  %v1316_v8 = vsub.f32 %v1164_v63, %v2413_v0  ;;  %v1169_v9 = vadd.f32 %v1168_v1, %v1167_v53  ;;  %v2461_v11 = vpop.f32.mrb[12].mxu1  ;;  %v2463_v12 = vpop.f32.mrb[44].mxu0  ;;  %v1030_v61 = vmul.f32 %v2397_v43, %v912_v5 }
 0x24b   : > { %v2465_v13 = vmul.f32 0.14285715, %v1305_v3  ;;  %v1093_v14 = vrot.slane %v1092_v4, 1  ;;  %v1847_v15 = vpop.f32.mrb[13].mxu1  ;;  %v2468_v17 = vpop.f32.mrb[45].mxu0  ;;  %v1175_v22 = vrot.slane %v1174_v10, 2  ;;  %v1845_v29 = vadd.f32 %v1844_v49, %v1843_v42 }
 0x24c   : > { %v2471_v20 = vmul.f32 0.14285715, %v1316_v8  ;;  %v1170_v21 = vrot.slane %v1169_v9, 1  ;;  %v2473_v23 = vpop.f32.mrb[14].mxu1  ;;  %v2475_v26 = vsel %vm997_vm10, %v912_v5, %v1030_v61  ;;  %v2478_v30 = vpop.f32.mrb[46].mxu0  ;;  %v2490_v42 = vsel %vm985_vm9, %v864_v48, %v1018_v27 }
 0x24d   : > { %v1094_v24 = vadd.f32 %v1093_v14, %v1092_v4  ;;  %v2480_v32 = vpop.f32.mrb[15].mxu1  ;;  %v1176_v38 = vadd.f32 %v1175_v22, %v1174_v10  ;;  %v1179_v39 = vsel %vm1080_vm1, %v2475_v26, 0.0  ;;  %v2485_v40 = vpop.f32.mrb[47].mxu0  ;;  %v1095_v51 = vsel %vm1080_vm1, %v2490_v42, 0.0 }
 0x24e   : > { %3084 = vst [vmem:[#allocation9_spill] sm:$0xff] %v2471_v20  ;;  %v1171_v35 = vadd.f32 %v1170_v21, %v1169_v9  ;;  %v1180_v45 = vrot.slane %v1179_v39, 4  ;;  %v1501_v52 = vrot.slane %v2490_v42, 6  ;;  %v1096_v57 = vrot.slane %v1095_v51, 4 }
 0x24f   : > { %v1306_v41 = vsub.f32 %v1094_v24, %v2425_v16  ;;  %v1177_v49 = vrot.slane %v1176_v38, 1  ;;  %v915_v60 = vadd.f32 %v1845_v29, %v2395_v36  ;;  %v867_v1 = vadd.f32 %v2427_v18, %v2395_v36 }
 0x250   : > { %v1317_v47 = vsub.f32 %v1171_v35, %v2434_v28  ;;  %v1181_v56 = vadd.f32 %v1180_v45, %v1179_v39  ;;  %v2504_v48 = vsel %vm1403_vm8, %v1501_v52, %v1500_v25  ;;  %v1097_v8 = vadd.f32 %v1096_v57, %v1095_v51 }
 0x251   : > { %v2496_v53 = vmul.f32 0.14285715, %v1306_v41  ;;  %v1178_v63 = vadd.f32 %v1177_v49, %v1176_v38  ;;  %vm998_vm11 = vcmp.ge.f32.partialorder %v915_v60, 0.0  ;;  %v1031_v14 = vmul.f32 %v2397_v43, %v915_v60 }
 0x252   : > { %v2499_v62 = vmul.f32 0.14285715, %v1317_v47  ;;  %v2508_v2 = vpop.f32.mrb[48].mxu0  ;;  %v2510_v3 = vpop.f32.mrb[16].mxu1  ;;  %v1182_v5 = vrot.slane %v1181_v56, 2  ;;  %vm986_vm12 = vcmp.ge.f32.partialorder %v867_v1, 0.0  ;;  %v1019_v24 = vmul.f32 %v2397_v43, %v867_v1 }
 0x253   : > { %v1401_v4 = vrot.slane %v2496_v53, 7  ;;  %v2513_v9 = vpop.f32.mrb[49].mxu0  ;;  %v2515_v10 = vpop.f32.mrb[17].mxu1  ;;  %v1318_v25 = vsub.f32 %v1178_v63, %v2450_v55  ;;  %v1098_v22 = vrot.slane %v1097_v8, 2  ;;  %v1812_v27 = vadd.f32 %v2441_v37, %v2436_v31 }
 0x254   : > { %3085 = vst [vmem:[#allocation10_spill] sm:$0xff] %v2499_v62  ;;  %v2520_v18 = vpop.f32.mrb[50].mxu0  ;;  %v2522_v61 = vpop.f32.mrb[18].mxu1  ;;  %v1183_v21 = vadd.f32 %v1182_v5, %v1181_v56  ;;  %v2534_v39 = vsel %vm998_vm11, %v915_v60, %v1031_v14  ;;  %v1815_v41 = vadd.f32 %v2447_v50, %v2444_v44  ;;  %v1848_v45 = vadd.f32 %v1847_v15, %v2461_v11 }
 0x255   : > { %v2527_v29 = vpop.f32.mrb[51].mxu0  ;;  %v2529_v35 = vpop.f32.mrb[19].mxu1  ;;  %v2531_v38 = vmul.f32 0.14285715, %v1318_v25  ;;  %v1099_v49 = vadd.f32 %v1098_v22, %v1097_v8  ;;  %v1186_v51 = vsel %vm1080_vm1, %v2534_v39, 0.0  ;;  %v2542_v31 = vsel %vm986_vm12, %v867_v1, %v1019_v24 }
 0x256   : > { %v1184_v47 = vrot.slane %v1183_v21, 1  ;;  %v1187_v52 = vrot.slane %v1186_v51, 4  ;;  %v1102_v56 = vsel %vm1080_vm1, %v2542_v31, 0.0  ;;  %v872_v11 = vadd.f32 %v1812_v27, %v2395_v36 }
 0x257   : > { %3086 = vst [vmem:[#allocation11_spill] sm:$0xff] %v2531_v38  ;;  %v1100_v44 = vrot.slane %v1099_v49, 1  ;;  %v1103_v50 = vrot.slane %v1102_v56, 4  ;;  %v875_v63 = vadd.f32 %v1815_v41, %v2395_v36  ;;  %v2551_v5 = vadd.f32 %v1848_v45, %v2395_v36 }
 0x258   : > { %v1185_v60 = vadd.f32 %v1184_v47, %v1183_v21  ;;  %v1188_v15 = vadd.f32 %v1187_v52, %v1186_v51  ;;  %v1818_v1 = vadd.f32 %v2468_v17, %v2463_v12  ;;  %vm987_vm13 = vcmp.ge.f32.partialorder %v872_v11, 0.0 }
 0x259   : > { %v1101_v14 = vadd.f32 %v1100_v44, %v1099_v49  ;;  %v1104_v22 = vadd.f32 %v1103_v50, %v1102_v56  ;;  %v1020_v27 = vmul.f32 %v2397_v43, %v872_v11  ;;  %vm988_vm14 = vcmp.ge.f32.partialorder %v875_v63, 0.0 }
 0x25a   : > { %v2555_v8 = vpop.f32.mrb[20].mxu1  ;;  %v1319_v25 = vsub.f32 %v1185_v60, %v2475_v26  ;;  %v1189_v24 = vrot.slane %v1188_v15, 2  ;;  %v1021_v41 = vmul.f32 %v2397_v43, %v875_v63  ;;  %v2569_v49 = vmul.f32 %v2397_v43, %v2551_v5 }
 0x25b   : > { %v2558_v21 = vpop.f32.mrb[21].mxu1  ;;  %v1307_v12 = vsub.f32 %v1101_v14, %v2490_v42  ;;  %v1105_v17 = vrot.slane %v1104_v22, 2  ;;  %v2573_v56 = vsel %vm987_vm13, %v872_v11, %v1020_v27  ;;  %v880_v44 = vadd.f32 %v1818_v1, %v2395_v36 }
 0x25c   : > { %v2562_v45 = vpop.f32.mrb[22].mxu1  ;;  %v2564_v47 = vmul.f32 0.14285715, %v1319_v25  ;;  %v1190_v52 = vadd.f32 %v1189_v24, %v1188_v15  ;;  %v2575_v60 = vsel %vm988_vm14, %v875_v63, %v1021_v41  ;;  %v1109_v42 = vsel %vm1080_vm1, %v2573_v56, 0.0 }
 0x25d   : > { %v2571_v51 = vpop.f32.mrb[23].mxu1  ;;  %v1339_v25 = vmul.f32 0.14285715, %v1307_v12  ;;  %v1106_v37 = vadd.f32 %v1105_v17, %v1104_v22  ;;  %v1110_v16 = vrot.slane %v1109_v42, 4  ;;  %v1116_v15 = vsel %vm1080_vm1, %v2575_v60, 0.0 }
 0x25e   : > { %3087 = vst [vmem:[#allocation12_spill] sm:$0xff] %v2564_v47  ;;  %v1191_v14 = vrot.slane %v1190_v52, 1  ;;  %v1117_v63 = vrot.slane %v1116_v15, 4  ;;  %vm989_vm0 = vcmp.ge.f32.partialorder %v880_v44, 0.0  ;;  %v1022_v22 = vmul.f32 %v2397_v43, %v880_v44 }
 0x25f   : > { %v1402_v11 = vrot.slane %v1339_v25, 6  ;;  %v1107_v24 = vrot.slane %v1106_v37, 1  ;;  %v1111_v41 = vadd.f32 %v1110_v16, %v1109_v42  ;;  %v1851_v25 = vadd.f32 %v2480_v32, %v2473_v23 }
 0x260   : > { %v1192_v1 = vadd.f32 %v1191_v14, %v1190_v52  ;;  %v1118_v46 = vadd.f32 %v1117_v63, %v1116_v15  ;;  %v2596_v16 = vsel %vm989_vm0, %v880_v44, %v1022_v22  ;;  %v1821_v42 = vadd.f32 %v2485_v40, %v2478_v30 }
 0x261   : > { %v1404_v17 = vsel %vm1403_vm8, %v1402_v11, %v1401_v4  ;;  %v1108_v50 = vadd.f32 %v1107_v24, %v1106_v37  ;;  %v1112_v14 = vrot.slane %v1111_v41, 2  ;;  %v1123_v37 = vsel %vm1080_vm1, %v2596_v16, 0.0 }
 0x262   : > { %v2586_v12 = vpop.f32.mrb[24].mxu1  ;;  %v1320_v52 = vsub.f32 %v1192_v1, %v2534_v39  ;;  %v1119_v4 = vrot.slane %v1118_v46, 2  ;;  %v1124_v44 = vrot.slane %v1123_v37, 4  ;;  %v923_v24 = vadd.f32 %v1851_v25, %v2395_v36 }
 0x263   : > { %v2593_v58 = vpop.f32.mrb[25].mxu1  ;;  %v1308_v53 = vsub.f32 %v1108_v50, %v2542_v31  ;;  %v1113_v11 = vadd.f32 %v1112_v14, %v1111_v41  ;;  %v883_v40 = vadd.f32 %v1821_v42, %v2395_v36  ;;  %v1824_v50 = vadd.f32 %v2513_v9, %v2508_v2 }
 0x264   : > { %v2600_v33 = vpop.f32.mrb[26].mxu1  ;;  %v2608_v15 = vmul.f32 0.14285715, %v1320_v52  ;;  %v1120_v30 = vadd.f32 %v1119_v4, %v1118_v46  ;;  %v1125_v6 = vadd.f32 %v1124_v44, %v1123_v37  ;;  %vm1000_vm2 = vcmp.ge.f32.partialorder %v923_v24, 0.0 }
 0x265   : > { %v2606_v32 = vpop.f32.mrb[27].mxu1  ;;  %v1340_v63 = vmul.f32 0.14285715, %v1308_v53  ;;  %v1114_v22 = vrot.slane %v1113_v11, 1  ;;  %v1033_v52 = vmul.f32 %v2397_v43, %v923_v24  ;;  %vm990_vm3 = vcmp.ge.f32.partialorder %v883_v40, 0.0 }
 0x266   : > { %3088 = vst [vmem:[#allocation13_spill] sm:$0xff] %v2608_v15  ;;  %v1121_v23 = vrot.slane %v1120_v30, 1  ;;  %v1126_v14 = vrot.slane %v1125_v6, 2  ;;  %v1023_v25 = vmul.f32 %v2397_v43, %v883_v40  ;;  %v2618_v46 = vadd.f32 %v1824_v50, %v2395_v36 }
 0x267   : > { %v1405_v19 = vrot.slane %v1340_v63, 5  ;;  %v1115_v41 = vadd.f32 %v1114_v22, %v1113_v11  ;;  %v2625_v53 = vsel %vm1000_vm2, %v923_v24, %v1033_v52  ;;  %v1854_v4 = vadd.f32 %v2515_v10, %v2510_v3 }
 0x268   : > { %v1122_v9 = vadd.f32 %v1121_v23, %v1120_v30  ;;  %v1127_v44 = vadd.f32 %v1126_v14, %v1125_v6  ;;  %v1200_v63 = vsel %vm1080_vm1, %v2625_v53, 0.0  ;;  %v1528_v50 = vrot.slane %v2625_v53, 7 }
 0x269   : > { %v2623_v2 = vsel %vm1406_vm15, %v1405_v19, %v1404_v17  ;;  %v1309_v11 = vsub.f32 %v1115_v41, %v2573_v56  ;;  %v1201_v17 = vrot.slane %v1200_v63, 4  ;;  %v2639_v23 = vsel %vm990_vm3, %v883_v40, %v1023_v25 }
 0x26a   : > { %v2620_v42 = vpop.f32.mrb[28].mxu1  ;;  %3089 = vst [vmem:[#allocation14_spill] sm:$0xff] %v2623_v2  ;;  %v1310_v19 = vsub.f32 %v1122_v9, %v2575_v60  ;;  %v2643_v3 = vmul.f32 %v2397_v43, %v2618_v46  ;;  %v1128_v24 = vrot.slane %v1127_v44, 1  ;;  %v1130_v30 = vsel %vm1080_vm1, %v2639_v23, 0.0 }
 0x26b   : > { %v2629_v37 = vpop.f32.mrb[29].mxu1  ;;  %v2647_v6 = vmul.f32 0.14285715, %v1309_v11  ;;  %v928_v52 = vadd.f32 %v1854_v4, %v2395_v36  ;;  %v1202_v14 = vadd.f32 %v1201_v17, %v1200_v63  ;;  %v1131_v9 = vrot.slane %v1130_v30, 4 }
 0x26c   : > { %v2635_v22 = vpop.f32.mrb[30].mxu1  ;;  %v2652_v41 = vmul.f32 0.14285715, %v1310_v19  ;;  %v1827_v40 = vadd.f32 %v2527_v29, %v2520_v18  ;;  %v1129_v1 = vadd.f32 %v1128_v24, %v1127_v44  ;;  %v1857_v63 = vadd.f32 %v2529_v35, %v2522_v61 }
 0x26d   : > { %v2645_v10 = vpop.f32.mrb[31].mxu1  ;;  %3090 = vst [vmem:[#allocation15_spill] sm:$0xff] %v2647_v6  ;;  %vm1001_vm4 = vcmp.ge.f32.partialorder %v928_v52, 0.0  ;;  %v1034_v11 = vmul.f32 %v2397_v43, %v928_v52  ;;  %v1203_v34 = vrot.slane %v1202_v14, 2  ;;  %v1132_v57 = vadd.f32 %v1131_v9, %v1130_v30 }
 0x26e   : > { %3091 = vst [vmem:[#allocation16_spill] sm:$0xff] %v2652_v41  ;;  %v891_v59 = vadd.f32 %v1827_v40, %v2395_v36  ;;  %v1311_v4 = vsub.f32 %v1129_v1, %v2596_v16  ;;  %v1860_v18 = vadd.f32 %v2558_v21, %v2555_v8  ;;  %vm1412_vm9 = vcmask 1044484  }
 0x26f   : > { %v2661_v19 = vsel %vm1001_vm4, %v928_v52, %v1034_v11  ;;  %v1204_v44 = vadd.f32 %v1203_v34, %v1202_v14  ;;  %v1133_v17 = vrot.slane %v1132_v57, 2  ;;  %v931_v14 = vadd.f32 %v1857_v63, %v2395_v36 }
 0x270   : > { %v1207_v24 = vsel %vm1080_vm1, %v2661_v19, 0.0  ;;  %v1529_v30 = vrot.slane %v2661_v19, 6  ;;  %v2674_v1 = vmul.f32 0.14285715, %v1311_v4  ;;  %vm992_vm5 = vcmp.ge.f32.partialorder %v891_v59, 0.0 }
 0x271   : > { %v1208_v52 = vrot.slane %v1207_v24, 4  ;;  %v1025_v61 = vmul.f32 %v2397_v43, %v891_v59  ;;  %v1205_v8 = vrot.slane %v1204_v44, 1  ;;  %v1134_v21 = vadd.f32 %v1133_v17, %v1132_v57 }
 0x272   : > { %v2667_v29 = vpop.f32.mrb[32].mxu1  ;;  %3092 = vst [vmem:[#allocation17_spill] sm:$0xff] %v2674_v1  ;;  %v2680_v34 = vsel %vm1403_vm8, %v1529_v30, %v1528_v50  ;;  %v936_v25 = vadd.f32 %v1860_v18, %v2395_v36  ;;  %vm1002_vm7 = vcmp.ge.f32.partialorder %v931_v14, 0.0  ;;  %v1035_v63 = vmul.f32 %v2397_v43, %v931_v14 }
 0x273   : > { %v2672_v9 = vpop.f32.mrb[33].mxu1  ;;  %v1209_v27 = vadd.f32 %v1208_v52, %v1207_v24  ;;  %v2686_v4 = vsel %vm992_vm5, %v891_v59, %v1025_v61  ;;  %v1206_v15 = vadd.f32 %v1205_v8, %v1204_v44  ;;  %v1135_v47 = vrot.slane %v1134_v21, 1 }
 0x274   : > { %v2677_v35 = vpop.f32.mrb[34].mxu1  ;;  %v1144_v57 = vsel %vm1080_vm1, %v2686_v4, 0.0  ;;  %v1514_v50 = vrot.slane %v2686_v4, 7  ;;  %v3093_v52 = vrot.slane %v2405_v54, 6  ;;  %vm1003_vm10 = vcmp.ge.f32.partialorder %v936_v25, 0.0 }
 0x275   : > { %v2683_v40 = vpop.f32.mrb[35].mxu1  ;;  %v1210_v17 = vrot.slane %v1209_v27, 2  ;;  %v1145_v30 = vrot.slane %v1144_v57, 4  ;;  %v1322_v24 = vsub.f32 %v1206_v15, %v2625_v53  ;;  %v1136_v59 = vadd.f32 %v1135_v47, %v1134_v21 }
 0x276   : > { %v2697_v18 = vsel %vm1403_vm8, %v3093_v52, %v1514_v50  ;;  %v2699_v8 = vsel %vm1002_vm7, %v931_v14, %v1035_v63  ;;  %v1036_v11 = vmul.f32 %v2397_v43, %v936_v25  ;;  %vm1415_vm11 = vcmask 1045509  }
 0x277   : > { %v1211_v44 = vadd.f32 %v1210_v17, %v1209_v27  ;;  %v1146_v61 = vadd.f32 %v1145_v30, %v1144_v57  ;;  %v1354_v62 = vmul.f32 0.14285715, %v1322_v24  ;;  %v1312_v20 = vsub.f32 %v1136_v59, %v2639_v23 }
 0x278   : > { %v1214_v47 = vsel %vm1080_vm1, %v2699_v8, 0.0  ;;  %v2710_v14 = vsel %vm1003_vm10, %v936_v25, %v1036_v11  ;;  %vm1418_vm12 = vcmask 1046534   ;;  %vm1420_vm13 = vcmask 1047559  }
 0x279   : > { %v1212_v53 = vrot.slane %v1211_v44, 1  ;;  %v1147_v27 = vrot.slane %v1146_v61, 2  ;;  %v1215_v21 = vrot.slane %v1214_v47, 4  ;;  %v1436_v50 = vrot.slane %v1354_v62, 7 }
 0x27a   : > { %v2702_v38 = vpop.f32.mrb[36].mxu1  ;;  %v2714_v17 = vmul.f32 0.14285715, %v1312_v20  ;;  %v1221_v30 = vsel %vm1080_vm1, %v2710_v14, 0.0  ;;  %vm991_vm14 = vcmp.ge.f32.partialorder %v2618_v46, 0.0  ;;  %v3094_v20 = vrot.slane %v2542_v31, 5 }
 0x27b   : > { %v2708_v15 = vpop.f32.mrb[37].mxu1  ;;  %v1213_v59 = vadd.f32 %v1212_v53, %v1211_v44  ;;  %v1148_v52 = vadd.f32 %v1147_v27, %v1146_v61  ;;  %v1216_v54 = vadd.f32 %v1215_v21, %v1214_v47  ;;  %v1222_v1 = vrot.slane %v1221_v30, 4 }
 0x27c   : > { %v2712_v57 = vpop.f32.mrb[38].mxu1  ;;  %v1417_v25 = vrot.slane %v2714_v17, 1  ;;  %v1504_v62 = vsel %vm1406_vm15, %v3094_v20, %v2504_v48  ;;  %v1511_v11 = vrot.slane %v2639_v23, 1  ;;  %v2731_v44 = vsel %vm991_vm14, %v2618_v46, %v2643_v3 }
 0x27d   : > { %v2719_v24 = vpop.f32.mrb[39].mxu1  ;;  %v1323_v63 = vsub.f32 %v1213_v59, %v2661_v19  ;;  %v1149_v41 = vrot.slane %v1148_v52, 1  ;;  %v1217_v6 = vrot.slane %v1216_v54, 2  ;;  %v1223_v2 = vadd.f32 %v1222_v1, %v1221_v30 }
 0x27e   : > { %v3095_v61 = vrot.slane %v2573_v56, 4  ;;  %v1863_v31 = vadd.f32 %v2571_v51, %v2562_v45  ;;  %v1866_v48 = vadd.f32 %v2593_v58, %v2586_v12  ;;  %v1137_v46 = vsel %vm1080_vm1, %v2731_v44, 0.0 }
 0x27f   : > { %v1355_v23 = vmul.f32 0.14285715, %v1323_v63  ;;  %v1150_v53 = vadd.f32 %v1149_v41, %v1148_v52  ;;  %v1218_v19 = vadd.f32 %v1217_v6, %v1216_v54  ;;  %v1224_v27 = vrot.slane %v1223_v2, 2 }
 0x280   : > { %v1506_v47 = vsel %vm1409_vm6, %v3095_v61, %v1504_v62  ;;  %v3096_v3 = vrot.slane %v2575_v60, 3  ;;  %v939_v1 = vadd.f32 %v1863_v31, %v2395_v36  ;;  %v944_v45 = vadd.f32 %v1866_v48, %v2395_v36 }
 0x281   : > { %v1437_v58 = vrot.slane %v1355_v23, 6  ;;  %v1314_v12 = vsub.f32 %v1150_v53, %v2686_v4  ;;  %v1219_v6 = vrot.slane %v1218_v19, 1  ;;  %v1225_v41 = vadd.f32 %v1224_v27, %v1223_v2 }
 0x282   : > { %v2740_v21 = vpop.f32.mrb[40].mxu1  ;;  %v1508_v56 = vsel %vm1412_vm9, %v3096_v3, %v1506_v47  ;;  %v1138_v30 = vrot.slane %v1137_v46, 4  ;;  %v3097_v63 = vrot.slane %v2596_v16, 2  ;;  %vm1004_vm0 = vcmp.ge.f32.partialorder %v939_v1, 0.0 }
 0x283   : > { %v2749_v51 = vpop.f32.mrb[41].mxu1  ;;  %v1037_v59 = vmul.f32 %v2397_v43, %v939_v1  ;;  %v1438_v20 = vsel %vm1403_vm8, %v1437_v58, %v1436_v50  ;;  %v1346_v62 = vmul.f32 0.14285715, %v1314_v12  ;;  %v1220_v61 = vadd.f32 %v1219_v6, %v1218_v19 }
 0x284   : > { %v2752_v54 = vpop.f32.mrb[42].mxu1  ;;  %v1510_v60 = vsel %vm1415_vm11, %v3097_v63, %v1508_v56  ;;  %v1226_v47 = vrot.slane %v1225_v41, 1  ;;  %v1139_v4 = vadd.f32 %v1138_v30, %v1137_v46  ;;  %vm1005_vm2 = vcmp.ge.f32.partialorder %v944_v45, 0.0 }
 0x285   : > { %v2758_v52 = vpop.f32.mrb[43].mxu1  ;;  %v1512_v2 = vsel %vm1418_vm12, %v1511_v11, %v1510_v60  ;;  %v2762_v31 = vsel %vm1004_vm0, %v939_v1, %v1037_v59  ;;  %v1422_v48 = vrot.slane %v1346_v62, 7  ;;  %v1324_v16 = vsub.f32 %v1220_v61, %v2699_v8 }
 0x286   : > { %v1227_v23 = vadd.f32 %v1226_v47, %v1225_v41  ;;  %v1513_v53 = vsel %vm1420_vm13, %v2731_v44, %v1512_v2  ;;  %v1140_v27 = vrot.slane %v1139_v4, 2  ;;  %v1228_v50 = vsel %vm1080_vm1, %v2762_v31, 0.0 }
 0x287   : > { %1557 = vrot.lane.b32.xlu0 %v1513_v53, %s2165_s14  ;;  %v1535_v19 = vrot.slane %v2762_v31, 3  ;;  %v1038_v11 = vmul.f32 %v2397_v43, %v944_v45  ;;  %v3098_v46 = vrot.slane %v2458_v7, 6  ;;  %v1356_v56 = vmul.f32 0.14285715, %v1324_v16 }
 0x288   : > { %v1325_v1 = vsub.f32 %v1227_v23, %v2710_v14  ;;  %v1229_v58 = vrot.slane %v1228_v50, 4  ;;  %v1141_v12 = vadd.f32 %v1140_v27, %v1139_v4  ;;  %v1869_v41 = vadd.f32 %v2606_v32, %v2600_v33 }
 0x289   : > { %v2775_v3 = vsel %vm1403_vm8, %v3098_v46, %v1422_v48  ;;  %v2778_v6 = vsel %vm1005_vm2, %v944_v45, %v1038_v11  ;;  %vm999_vm3 = vcmp.ge.f32.partialorder %v2551_v5, 0.0  ;;  %v1439_v30 = vrot.slane %v1356_v56, 5 }
 0x28a   : > { %v2783_v63 = vmul.f32 0.14285715, %v1325_v1  ;;  %v1230_v60 = vadd.f32 %v1229_v58, %v1228_v50  ;;  %v1235_v7 = vsel %vm1080_vm1, %v2778_v6, 0.0  ;;  %v1142_v59 = vrot.slane %v1141_v12, 1 }
 0x28b   : > { %v1236_v62 = vrot.slane %v1235_v7, 4  ;;  %v1537_v61 = vrot.slane %v2778_v6, 2  ;;  %v947_v47 = vadd.f32 %v1869_v41, %v2395_v36  ;;  %v2790_v45 = vsel %vm1406_vm15, %v1439_v30, %v1438_v20 }
 0x28c   : > { %v1441_v33 = vrot.slane %v2783_v63, 4  ;;  %v1231_v32 = vrot.slane %v1230_v60, 2  ;;  %v2795_v4 = vsel %vm999_vm3, %v2551_v5, %v2569_v49  ;;  %v1143_v2 = vadd.f32 %v1142_v59, %v1141_v12 }
 0x28d   : > { %v1237_v48 = vadd.f32 %v1236_v62, %v1235_v7  ;;  %vm1006_vm4 = vcmp.ge.f32.partialorder %v947_v47, 0.0  ;;  %v1039_v16 = vmul.f32 %v2397_v43, %v947_v47  ;;  %v1193_v53 = vsel %vm1080_vm1, %v2795_v4, 0.0 }
 0x28e   : > { %v1232_v23 = vadd.f32 %v1231_v32, %v1230_v60  ;;  %v3099_v20 = vrot.slane %v2413_v0, 5  ;;  %v1525_v50 = vrot.slane %v2534_v39, 1  ;;  %v1313_v11 = vsub.f32 %v1143_v2, %v2731_v44 }
 0x28f   : > { %v1238_v5 = vrot.slane %v1237_v48, 2  ;;  %v2806_v49 = vsel %vm1006_vm4, %v947_v47, %v1039_v16  ;;  %v1194_v46 = vrot.slane %v1193_v53, 4  ;;  %v3100_v58 = vrot.slane %v2434_v28, 4 }
 0x290   : > { %v1518_v27 = vsel %vm1406_vm15, %v3099_v20, %v2697_v18  ;;  %v1233_v56 = vrot.slane %v1232_v23, 1  ;;  %v1242_v1 = vsel %vm1080_vm1, %v2806_v49, 0.0  ;;  %v1872_v0 = vadd.f32 %v2629_v37, %v2620_v42 }
 0x291   : > { %v1520_v12 = vsel %vm1409_vm6, %v3100_v58, %v1518_v27  ;;  %v2815_v18 = vmul.f32 0.14285715, %v1313_v11  ;;  %v1239_v39 = vadd.f32 %v1238_v5, %v1237_v48  ;;  %v1243_v41 = vrot.slane %v1242_v1, 4 }
 0x292   : > { %v1195_v44 = vadd.f32 %v1194_v46, %v1193_v53  ;;  %v1234_v30 = vadd.f32 %v1233_v56, %v1232_v23  ;;  %v3101_v60 = vrot.slane %v2450_v55, 3  ;;  %v952_v59 = vadd.f32 %v1872_v0, %v2395_v36 }
 0x293   : > { %v1875_v28 = vadd.f32 %v2645_v10, %v2635_v22  ;;  %v1240_v62 = vrot.slane %v1239_v39, 1  ;;  %v1244_v47 = vadd.f32 %v1243_v41, %v1242_v1  ;;  %v3102_v42 = vrot.slane %v2475_v26, 2 }
 0x294   : > { %v1522_v7 = vsel %vm1412_vm9, %v3101_v60, %v1520_v12  ;;  %v1196_v32 = vrot.slane %v1195_v44, 2  ;;  %v1326_v2 = vsub.f32 %v1234_v30, %v2762_v31  ;;  %v1040_v55 = vmul.f32 %v2397_v43, %v952_v59 }
 0x295   : > { %v1524_v37 = vsel %vm1415_vm11, %v3102_v42, %v1522_v7  ;;  %v955_v16 = vadd.f32 %v1875_v28, %v2395_v36  ;;  %v1241_v23 = vadd.f32 %v1240_v62, %v1239_v39  ;;  %v1245_v53 = vrot.slane %v1244_v47, 2 }
 0x296   : > { %v1526_v48 = vsel %vm1418_vm12, %v1525_v50, %v1524_v37  ;;  %v1197_v20 = vadd.f32 %v1196_v32, %v1195_v44  ;;  %v2832_v10 = vmul.f32 0.14285715, %v1326_v2  ;;  %v1878_v27 = vadd.f32 %v2672_v9, %v2667_v29 }
 0x297   : > { %v1527_v22 = vsel %vm1420_vm13, %v2795_v4, %v1526_v48  ;;  %vm1008_vm5 = vcmp.ge.f32.partialorder %v955_v16, 0.0  ;;  %v1041_v26 = vmul.f32 %v2397_v43, %v955_v16  ;;  %v1327_v50 = vsub.f32 %v1241_v23, %v2778_v6  ;;  %v2063_v6 = vld [vmem:[%s3068_s4] ss:$0 sm:$0xff] }
 0x298   : > { %1559 = vrot.lane.b32.xlu1 %v1527_v22, %s2165_s14  ;;  %v1246_v11 = vadd.f32 %v1245_v53, %v1244_v47  ;;  %v1198_v5 = vrot.slane %v1197_v20, 1  ;;  %vm1007_vm7 = vcmp.ge.f32.partialorder %v952_v59, 0.0  ;;  %v1443_v46 = vrot.slane %v2832_v10, 3 }
 0x299   : > { %v2840_v56 = vsel %vm1008_vm5, %v955_v16, %v1041_v26  ;;  %v960_v1 = vadd.f32 %v1878_v27, %v2395_v36  ;;  %v2843_v58 = vsel %vm1007_vm7, %v952_v59, %v1040_v55  ;;  %v2845_v12 = vmul.f32 0.14285715, %v1327_v50 }
 0x29a   : > { %v1247_v0 = vrot.slane %v1246_v11, 1  ;;  %v1199_v39 = vadd.f32 %v1198_v5, %v1197_v20  ;;  %v1256_v29 = vsel %vm1080_vm1, %v2840_v56, 0.0  ;;  %v1542_v41 = vrot.slane %v2840_v56, 7 }
 0x29b   : > { %v1257_v9 = vrot.slane %v1256_v29, 4  ;;  %vm1009_vm10 = vcmp.ge.f32.partialorder %v960_v1, 0.0  ;;  %v1042_v44 = vmul.f32 %v2397_v43, %v960_v1  ;;  %v1445_v30 = vrot.slane %v2845_v12, 2 }
 0x29c   : > { %v1248_v60 = vadd.f32 %v1247_v0, %v1246_v11  ;;  %v1321_v7 = vsub.f32 %v1199_v39, %v2795_v4  ;;  %v1249_v59 = vsel %vm1080_vm1, %v2843_v58, 0.0  ;;  %v3103_v32 = vrot.slane %v2699_v8, 5 }
 0x29d   : > { %v1258_v28 = vadd.f32 %v1257_v9, %v1256_v29  ;;  %v2855_v62 = vsel %vm1009_vm10, %v960_v1, %v1042_v44  ;;  %v1250_v47 = vrot.slane %v1249_v59, 4  ;;  %v3104_v53 = vrot.slane %v2710_v14, 4 }
 0x29e   : > { %v1532_v42 = vsel %vm1406_vm15, %v3103_v32, %v2680_v34  ;;  %v1328_v37 = vsub.f32 %v1248_v60, %v2806_v49  ;;  %v2862_v2 = vmul.f32 0.14285715, %v1321_v7  ;;  %v1263_v48 = vsel %vm1080_vm1, %v2855_v62, 0.0 }
 0x29f   : > { %v1543_v4 = vrot.slane %v2855_v62, 6  ;;  %v1259_v55 = vrot.slane %v1258_v28, 2  ;;  %v1264_v16 = vrot.slane %v1263_v48, 4  ;;  %v1251_v23 = vadd.f32 %v1250_v47, %v1249_v59 }
 0x2a0   : > { %v1534_v20 = vsel %vm1409_vm6, %v3104_v53, %v1532_v42  ;;  %v2870_v22 = vmul.f32 0.14285715, %v1328_v37  ;;  %v1539_v8 = vrot.slane %v2806_v49, 1  ;;  %v1881_v26 = vadd.f32 %v2683_v40, %v2677_v35 }
 0x2a1   : > { %v1536_v34 = vsel %vm1412_vm9, %v1535_v19, %v1534_v20  ;;  %v1260_v27 = vadd.f32 %v1259_v55, %v1258_v28  ;;  %v1265_v50 = vadd.f32 %v1264_v16, %v1263_v48  ;;  %v1252_v11 = vrot.slane %v1251_v23, 2 }
 0x2a2   : > { %v1538_v14 = vsel %vm1415_vm11, %v1537_v61, %v1536_v34  ;;  %v1447_v5 = vrot.slane %v2870_v22, 1  ;;  %v963_v31 = vadd.f32 %v1881_v26, %v2395_v36  ;;  %v1884_v19 = vadd.f32 %v2708_v15, %v2702_v38 }
 0x2a3   : > { %v1540_v1 = vsel %vm1418_vm12, %v1539_v8, %v1538_v14  ;;  %v1261_v49 = vrot.slane %v1260_v27, 1  ;;  %v1266_v0 = vrot.slane %v1265_v50, 2  ;;  %v1253_v39 = vadd.f32 %v1252_v11, %v1251_v23 }
 0x2a4   : > { %v1541_v35 = vsel %vm1420_vm13, %v2843_v58, %v1540_v1  ;;  %vm1010_vm14 = vcmp.ge.f32.partialorder %v963_v31, 0.0  ;;  %v1043_v40 = vmul.f32 %v2397_v43, %v963_v31  ;;  %v968_v61 = vadd.f32 %v2063_v6, %v1884_v19 }
 0x2a5   : > { %1561 = vrot.lane.b32.xlu1 %v1541_v35, %s2165_s14  ;;  %v1887_v36 = vadd.f32 %v2719_v24, %v2712_v57  ;;  %v1262_v38 = vadd.f32 %v1261_v49, %v1260_v27  ;;  %v1267_v15 = vadd.f32 %v1266_v0, %v1265_v50  ;;  %v1254_v29 = vrot.slane %v1253_v39, 1 }
 0x2a6   : > { %v1890_v9 = vadd.f32 %v2749_v51, %v2740_v21  ;;  %v2897_v44 = vsel %vm1010_vm14, %v963_v31, %v1043_v40  ;;  %vm1011_vm0 = vcmp.ge.f32.partialorder %v968_v61, 0.0  ;;  %v1044_v60 = vmul.f32 %v2397_v43, %v968_v61 }
 0x2a7   : > { %v971_v7 = vadd.f32 %v2063_v6, %v1887_v36  ;;  %v1330_v59 = vsub.f32 %v1262_v38, %v2840_v56  ;;  %v1268_v28 = vrot.slane %v1267_v15, 1  ;;  %v1255_v47 = vadd.f32 %v1254_v29, %v1253_v39 }
 0x2a8   : > { %v1270_v57 = vsel %vm1080_vm1, %v2897_v44, 0.0  ;;  %v1545_v32 = vrot.slane %v2897_v44, 5  ;;  %v2904_v42 = vsel %vm1011_vm0, %v968_v61, %v1044_v60  ;;  %v976_v26 = vadd.f32 %v2063_v6, %v1890_v9 }
 0x2a9   : > { %v1271_v24 = vrot.slane %v1270_v57, 4  ;;  %vm1012_vm2 = vcmp.ge.f32.partialorder %v971_v7, 0.0  ;;  %v1362_v21 = vmul.f32 0.14285715, %v1330_v59  ;;  %v1269_v51 = vadd.f32 %v1268_v28, %v1267_v15  ;;  %v3105_v28 = vld [vmem:[#allocation14_spill] sm:$0xff] }
 0x2aa   : > { %v1329_v37 = vsub.f32 %v1255_v47, %v2843_v58  ;;  %v1277_v48 = vsel %vm1080_vm1, %v2904_v42, 0.0  ;;  %v1547_v23 = vrot.slane %v2904_v42, 4  ;;  %v1045_v53 = vmul.f32 %v2397_v43, %v971_v7  ;;  %v3106_v47 = vld [vmem:[#allocation15_spill] sm:$0xff] }
 0x2ab   : > { %v1272_v55 = vadd.f32 %v1271_v24, %v1270_v57  ;;  %v1278_v16 = vrot.slane %v1277_v48, 4  ;;  %v1450_v20 = vrot.slane %v1362_v21, 7  ;;  %v1331_v34 = vsub.f32 %v1269_v51, %v2855_v62 }
 0x2ac   : > { %v2913_v8 = vmul.f32 0.14285715, %v1329_v37  ;;  %v2916_v58 = vsel %vm1012_vm2, %v971_v7, %v1045_v53  ;;  %v1893_v11 = vadd.f32 %v2758_v52, %v2752_v54  ;;  %vm1013_vm3 = vcmp.ge.f32.partialorder %v976_v26, 0.0  ;;  %v3108_v53 = vld [vmem:[#allocation16_spill] sm:$0xff] }
 0x2ad   : > { %v1273_v27 = vrot.slane %v1272_v55, 2  ;;  %v1279_v50 = vadd.f32 %v1278_v16, %v1277_v48  ;;  %v1363_v14 = vmul.f32 0.14285715, %v1331_v34  ;;  %v1284_v1 = vsel %vm1080_vm1, %v2916_v58, 0.0 }
 0x2ae   : > { %v1549_v31 = vrot.slane %v2916_v58, 3  ;;  %v1556_v19 = vpop.permute.xlu0 %1555  ;;  %v1285_v39 = vrot.slane %v1284_v1, 4  ;;  %v1046_v35 = vmul.f32 %v2397_v43, %v976_v26  ;;  %v979_v61 = vadd.f32 %v2063_v6, %v1893_v11 }
 0x2af   : > { %v1274_v49 = vadd.f32 %v1273_v27, %v1272_v55  ;;  %v1280_v0 = vrot.slane %v1279_v50, 2  ;;  %v1451_v40 = vrot.slane %v1363_v14, 6  ;;  %v1544_v54 = vsel %vm1403_vm8, %v1543_v4, %v1542_v41  ;;  %v3110_v14 = vld [vmem:[#allocation17_spill] sm:$0xff] }
 0x2b0   : > { %v1570_v52 = vsel %vm1080_vm1, %v2465_v13, %v1556_v19  ;;  %v1286_v15 = vadd.f32 %v1285_v39, %v1284_v1  ;;  %v2931_v29 = vsel %vm1013_vm3, %v976_v26, %v1046_v35  ;;  %vm1014_vm4 = vcmp.ge.f32.partialorder %v979_v61, 0.0 }
 0x2b1   : > { %v1275_v36 = vrot.slane %v1274_v49, 1  ;;  %v1281_v38 = vadd.f32 %v1280_v0, %v1279_v50  ;;  %1575 = vst [vmem:[%s2933_s13 - $0x7] sm:$0x80] %v1570_v52  ;;  %v1452_v6 = vsel %vm1403_vm8, %v1451_v40, %v1450_v20  ;;  %v1291_v56 = vsel %vm1080_vm1, %v2931_v29, 0.0  ;;  %v3114_v52 = vld [vmem:[#allocation10_spill] sm:$0xff] }
 0x2b2   : > { %v1047_v41 = vmul.f32 %v2397_v43, %v979_v61  ;;  %v1287_v13 = vrot.slane %v1286_v15, 2  ;;  %v1292_v9 = vrot.slane %v1291_v56, 4  ;;  %v1546_v7 = vsel %vm1406_vm15, %v1545_v32, %v1544_v54 }
 0x2b3   : > { %v1276_v62 = vadd.f32 %v1275_v36, %v1274_v49  ;;  %v1282_v4 = vrot.slane %v1281_v38, 1  ;;  %v1551_v59 = vrot.slane %v2931_v29, 2  ;;  %v3107_v57 = vrot.slane %v3106_v47, 4  ;;  %v3112_v49 = vld [vmem:[#allocation9_spill] sm:$0xff] }
 0x2b4   : > { %v1079_v60 = vsel %vm1014_vm4, %v979_v61, %v1047_v41  ;;  %v1288_v37 = vadd.f32 %v1287_v13, %v1286_v15  ;;  %v1293_v48 = vadd.f32 %v1292_v9, %v1291_v56  ;;  %v1548_v55 = vsel %vm1409_vm6, %v1547_v23, %v1546_v7  ;;  %v3116_v13 = vld [vmem:[#allocation11_spill] sm:$0xff] }
 0x2b5   : > { %v1410_v24 = vsel %vm1409_vm6, %v3107_v57, %v3105_v28  ;;  %v1332_v21 = vsub.f32 %v1276_v62, %v2897_v44  ;;  %v1283_v51 = vadd.f32 %v1282_v4, %v1281_v38  ;;  %v1298_v43 = vsel %vm1080_vm1, %v1079_v60, 0.0 }
 0x2b6   : > { %v1553_v16 = vrot.slane %v1079_v60, 1  ;;  %v3109_v20 = vrot.slane %v3108_v53, 3  ;;  %v1289_v27 = vrot.slane %v1288_v37, 1  ;;  %v1294_v50 = vrot.slane %v1293_v48, 2 }
 0x2b7   : > { %v1364_v34 = vmul.f32 0.14285715, %v1332_v21  ;;  %v1333_v26 = vsub.f32 %v1283_v51, %v2904_v42  ;;  %v1299_v11 = vrot.slane %v1298_v43, 4  ;;  %v1550_v44 = vsel %vm1412_vm9, %v1549_v31, %v1548_v55 }
 0x2b8   : > { %v1413_v32 = vsel %vm1412_vm9, %v3109_v20, %v1410_v24  ;;  %v3111_v1 = vrot.slane %v3110_v14, 2  ;;  %v3113_v23 = vrot.slane %v3112_v49, 5  ;;  %v1290_v40 = vadd.f32 %v1289_v27, %v1288_v37  ;;  %v3120_v24 = vld [vmem:[#allocation13_spill] sm:$0xff] }
 0x2b9   : > { %v1453_v39 = vrot.slane %v1364_v34, 5  ;;  %v1365_v35 = vmul.f32 0.14285715, %v1333_v26  ;;  %v1295_v61 = vadd.f32 %v1294_v50, %v1293_v48  ;;  %v1300_v54 = vadd.f32 %v1299_v11, %v1298_v43 }
 0x2ba   : > { %v1416_v19 = vsel %vm1415_vm11, %v3111_v1, %v1413_v32  ;;  %v1426_v0 = vsel %vm1406_vm15, %v3113_v23, %v2775_v3  ;;  %v1552_v42 = vsel %vm1415_vm11, %v1551_v59, %v1550_v44  ;;  %v3115_v36 = vrot.slane %v3114_v52, 4  ;;  %v3118_v59 = vld [vmem:[#allocation12_spill] sm:$0xff] }
 0x2bb   : > { %v1419_v31 = vsel %vm1418_vm12, %v1417_v25, %v1416_v19  ;;  %v1455_v15 = vrot.slane %v1365_v35, 4  ;;  %v1334_v56 = vsub.f32 %v1290_v40, %v2916_v58  ;;  %v1296_v41 = vrot.slane %v1295_v61, 1 }
 0x2bc   : > { %v1428_v38 = vsel %vm1409_vm6, %v3115_v36, %v1426_v0  ;;  %v1554_v3 = vsel %vm1418_vm12, %v1553_v16, %v1552_v42  ;;  %v1301_v62 = vrot.slane %v1300_v54, 2  ;;  %v1421_v4 = vsel %vm1420_vm13, %v2815_v18, %v1419_v31 }
 0x2bd   : > { %1563 = vrot.lane.b32.xlu0 %v1554_v3, %s2165_s14  ;;  %v3117_v17 = vrot.slane %v3116_v13, 3  ;;  %v1442_v9 = vsel %vm1409_vm6, %v1441_v33, %v2790_v45  ;;  %v1366_v7 = vmul.f32 0.14285715, %v1334_v56  ;;  %v1297_v58 = vadd.f32 %v1296_v41, %v1295_v61 }
 0x2be   : > { %v3119_v28 = vrot.slane %v3118_v59, 2  ;;  %v1444_v57 = vsel %vm1412_vm9, %v1443_v46, %v1442_v9  ;;  %v1302_v18 = vadd.f32 %v1301_v62, %v1300_v54  ;;  %v3121_v21 = vrot.slane %v3120_v24, 1 }
 0x2bf   : > { %v1430_v25 = vsel %vm1412_vm9, %v3117_v17, %v1428_v38  ;;  %v1446_v63 = vsel %vm1415_vm11, %v1445_v30, %v1444_v57  ;;  %v1454_v45 = vsel %vm1406_vm15, %v1453_v39, %v1452_v6  ;;  %v1457_v33 = vrot.slane %v1366_v7, 3 }
 0x2c0   : > { %v1432_v47 = vsel %vm1415_vm11, %v3119_v28, %v1430_v25  ;;  %v1335_v37 = vsub.f32 %v1297_v58, %v2931_v29  ;;  %v1448_v10 = vsel %vm1418_vm12, %v1447_v5, %v1446_v63  ;;  %v1303_v46 = vrot.slane %v1302_v18, 1 }
 0x2c1   : > { %v1434_v51 = vsel %vm1418_vm12, %v3121_v21, %v1432_v47  ;;  %v1449_v43 = vsel %vm1420_vm13, %v2913_v8, %v1448_v10  ;;  %v1456_v12 = vsel %vm1409_vm6, %v1455_v15, %v1454_v45 }
 0x2c2   : > { %v1435_v48 = vsel %vm1420_vm13, %v2862_v2, %v1434_v51  ;;  %v1367_v30 = vmul.f32 0.14285715, %v1335_v37  ;;  %v1458_v6 = vsel %vm1412_vm9, %v1457_v33, %v1456_v12  ;;  %v1304_v29 = vadd.f32 %v1303_v46, %v1302_v18 }
 0x2c4   : > { %v1459_v55 = vrot.slane %v1367_v30, 2  ;;  %v1336_v2 = vsub.f32 %v1304_v29, %v1079_v60 }
 0x2c6   : > { %v1460_v22 = vsel %vm1415_vm11, %v1459_v55, %v1458_v6  ;;  %v1368_v16 = vmul.f32 0.14285715, %v1336_v2 }
 0x2c8   : > { %v1461_v5 = vrot.slane %v1368_v16, 1 }
 0x2ca   : > { %v1462_v53 = vsel %vm1418_vm12, %v1461_v5, %v1460_v22 }
 0x2f9   : > { %v1558_v8 = vpop.permute.xlu0 %1557 }
 0x2fa   : > { %v1571_v20 = vsel %vm1080_vm1, %v1421_v4, %v1558_v8 }
 0x2fb   : > { %1576 = vst [vmem:[%s2933_s13 + $0x1] sm:$0xff] %v1571_v20 }
 0x30a   : > { %v1560_v32 = vpop.permute.xlu1 %1559 }
 0x30b   : > { %v1572_v34 = vsel %vm1080_vm1, %v1435_v48, %v1560_v32 }
 0x30c   : > { %1577 = vst [vmem:[%s2933_s13 + $0x9] sm:$0xff] %v1572_v34 }
 0x317   : > { %v1562_v26 = vpop.permute.xlu1 %1561 }
 0x318   : > { %v1573_v60 = vsel %vm1080_vm1, %v1449_v43, %v1562_v26 }
 0x319   : > { %1578 = vst [vmem:[%s2933_s13 + $0x11] sm:$0xff] %v1573_v60 }
 0x32f   : > { %v1564_v27 = vpop.permute.xlu0 %1563 }
 0x330   : > { %v1574_v50 = vsel %vm1080_vm1, %v1462_v53, %v1564_v27 }
 0x331   : > { %1579 = vst [vmem:[%s2933_s13 + $0x19] sm:$0x7f] %v1574_v50 }
 0x332   : > { %2107 = shalt.err (!%p2104_p4)
}
 0x333   : > { %s2108_s11 = scalar_lea.hbm %s3018_s29, 512  ;;  %s2112_s19 = scalar_lea.hbm %s3069_s5, 1024 }
 0x334   : > { %p2109_p5 = scmp.ne.s32.totalorder %s3018_s29, %s2108_s11  ;;  %p2113_p1 = scmp.lt.u32.totalorder %s3018_s29, %s3069_s5 }
 0x335   : > { %p2114_p3 = scmp.lt.u32.totalorder %s2112_s19, %s2108_s11  ;;  %p2116_p6 = scmp.lt.u32.totalorder %s2108_s11, %s3018_s29 }
 0x336   : > { %p2110_p7 = pnand %p2109_p5, %p3122_p12 }
 0x337   : > { %p2115_p11 = por %p2114_p3, %p2113_p1 }
 0x338   : > { %p2111_p9 = pneg %p2110_p7 }
 0x339   : > { %p2117_p13 = por %p2116_p6, %p2115_p11 }
 0x33b   : > { %p2118_p8 = pnand %p2117_p13, %p2111_p9 }
 0x33d   : > { %2121 = shalt.err (!%p2118_p8)
}
 0x33e   : > { %s2167_s13 = smov 128   ;;  %s2168_s16 = smov 8  }
 0x33f   : > { %1948 = dma.vmem_to_hbm [thread:$0]  (%p3122_p12), %s3013_s15, 512, %s3018_s29, %s1581_s8, %s2167_s13, %s2167_s13, %s2168_s16  }
 0x340 PF: > { %s1609_s17 = sand.u32 1, %s2148_s20   ;;  %p3123_p10 = scmp.ne.s32.totalorder %s3082_s7, 0 }
 0x341   : > { %p3124_p0 = scmp.ge.s32.totalorder %s2160_s23, 2  ;;  %s1610_s27 = scalar_lea.sflag [#allocation5], %s1609_s17 }
 0x343   : > { %p1955_p2 = pnand %p3124_p0, %p3123_p10 }
 0x345   : > { %2143 = dma.done.wait (!%p1955_p2), %s1610_s27, 512  }
 0x346   : > { %2145 = vsyncadd (!%p1955_p2), %s1610_s27, 4294966784  ;;  %p19_p4 = scmp.ge.s32.totalorder %s2227_s25, 4   ;;  %s3125_s20 = smov %s2152_s21 }
 0x347   : > { %s3126_s21 = smov %s2156_s22  ;;  %s3127_s22 = smov %s2239_s28 }
 0x348   : > { %s3128_s23 = smov %s2227_s25  ;;  %21 = sbr.rel (!%p19_p4) target bundleno = 7 (0x7), region = 88 }
 0x34f   :  { %1615 = vsyncpa [#allocation4], 1 }
 0x350   :  { %1617 = vsyncpa [#allocation4 + $0x1], 1 }
 0x351   :  { %1618 = vsyncpa [#allocation5], 1 }
 0x352   :  { %1620 = vsyncpa [#allocation5 + $0x1], 1 }

</bundles_post_ra>
